<compile_context>
chip_gen: v5e
topology: v5e:2x2
jax: 0.10.0
libtpu: 0.0.40
codegen_flags: <defaults>
</compile_context>

<pallas_src>
import jax
import jax.numpy as jnp
from jax import lax
from jax.experimental import pallas as pl
from jax.experimental.pallas import tpu as pltpu

# ---------------- hyper-parameters ----------------
K_LAT = 2            # bottleneck dimensionality K
NF = 8               # num_filters
SEQ_LEN = 128        # sequence_length
CHANNELS = 1
SAMPLE_RATE = 8
KS = SAMPLE_RATE // 2 + 1        # kernel_size = 5
PAD = KS // 2                    # 2  -> "same" length convs
IMAGE_SIZE = SEQ_LEN * CHANNELS
L = IMAGE_SIZE                   # per-element sequence length (== 128, one lane tile)


# ---------------- in-kernel helpers ----------------
def _edge_masks(width):
    """Per-offset masks that zero taps falling outside each length-L lane segment."""
    lane_mod = lax.broadcasted_iota(jnp.int32, (1, width), 1) % L
    masks = {}
    for off in range(-PAD, PAD + 1):
        if off == 0:
            continue
        masks[off] = (lane_mod < (L - off)) if off > 0 else (lane_mod >= (-off))
    return masks


def _shift_same(h, off, masks):
    """h[:, p] -> h[:, p + off] with zero fill outside each length-L lane segment."""
    if off == 0:
        return h
    w = h.shape[-1]
    rolled = pltpu.roll(h, shift=(-off) % w, axis=1)      # XLU lane rotate
    return jnp.where(masks[off], rolled, 0.0)


def _conv_same(h, w_s, b_col, masks):
    """'same' 1-D conv over length-L segments folded into the lane axis.

    h:     (Ci, W) activations, W a multiple of L (one segment per batch element).
    w_s:   (Co, KS*Ci) tap-stacked weights, column j*Ci + ci == w[co, ci, j].
    b_col: (Co, 1) bias.
    returns (Co, W) float32.
    """
    taps = [_shift_same(h, j - PAD, masks) for j in range(KS)]
    stacked = jnp.concatenate(taps, axis=0)                # (KS*Ci, W)
    return jnp.dot(w_s, stacked, preferred_element_type=jnp.float32) + b_col


# ---------------- fused VAE kernel ----------------
def vae_kernel(x_ref, eps_ref,
               w1_ref, b1_ref, w2_ref, b2_ref, w3_ref, b3_ref,
               wenc_ref, benc_ref, ssum_ref,
               eb_ref, wdec_ref, bdec_ref,
               wt1_ref, bt1_ref, wt2_ref, bt2_ref, wt3_ref, bt3_ref,
               out_ref):
    we = x_ref.shape[-1]            # BT * L        (encoder lanes)
    wd = out_ref.shape[-1]          # BT * N * L    (decoder lanes)
    masks_e = _edge_masks(we)
    masks_d = _edge_masks(wd)

    # ---------- encoder: 3 x (conv + relu), batched over lane segments ----------
    h = jnp.maximum(_conv_same(x_ref[...], w1_ref[...], b1_ref[...], masks_e), 0.0)
    h = jnp.maximum(_conv_same(h, w2_ref[...], b2_ref[...], masks_e), 0.0)
    h = jnp.maximum(_conv_same(h, w3_ref[...], b3_ref[...], masks_e), 0.0)

    # ---------- flatten + Linear(NF*L -> K+1) ----------
    # per-output: multiply with the (tiled) weight plane, reduce channels (sublanes),
    # then segment-sum each length-L lane block with one matmul against ssum.
    rows = [jnp.sum(wenc_ref[q] * h, axis=0, keepdims=True)
            for q in range(K_LAT + 1)]
    u = jnp.concatenate(rows, axis=0)                                   # (K+1, WE)
    phi_t = (jnp.dot(u, ssum_ref[...], preferred_element_type=jnp.float32)
             + benc_ref[...])                                           # (K+1, BT)

    # ---------- rsample: z = mu + eps * exp(log_sigma) (shared log_sigma) -------
    # broadcast per-batch phi onto the decoder lane layout with one tiny matmul.
    phi_sel = jnp.dot(phi_t, eb_ref[...],
                      preferred_element_type=jnp.float32)               # (K+1, WD)
    sig = jnp.exp(phi_sel[K_LAT:K_LAT + 1])                             # (1, WD)
    z = phi_sel[:K_LAT] + eps_ref[...] * sig                            # (K, WD)

    # ---------- decoder: Linear(K -> NF*L) + relu ----------
    h = bdec_ref[...]                                                   # (NF, WD)
    for k in range(K_LAT):
        h = h + z[k:k + 1, :] * wdec_ref[k]
    h = jnp.maximum(h, 0.0)

    # ---------- 3 x ConvTranspose1d (stride 1, "same") as equivalent convs ------
    h = jnp.maximum(_conv_same(h, wt1_ref[...], bt1_ref[...], masks_d), 0.0)
    h = jnp.maximum(_conv_same(h, wt2_ref[...], bt2_ref[...], masks_d), 0.0)
    out_ref[...] = jnp.tanh(_conv_same(h, wt3_ref[...], bt3_ref[...], masks_d))


# ---------------- one-time parameter preparation (hoisted out of forward) -------
def _stack_conv(w):
    """(Co, Ci, KS) conv weight -> (Co, KS*Ci) tap-stacked matrix."""
    co, ci, ks = w.shape
    return jnp.transpose(w, (0, 2, 1)).reshape(co, ks * ci)


def _convT_to_conv(wt):
    """ConvTranspose1d weight (Cin, Cout, KS), stride 1, pad KS//2
    == Conv1d weight w_eq[co, ci, j] = wt[ci, co, KS-1-j]."""
    return jnp.transpose(jnp.flip(wt, axis=-1), (1, 0, 2))


def prepare_params(params, batch_tile, n_samples):
    """Precompute kernel-layout weights/constants for a fixed (batch_tile, n)."""
    bt, n = batch_tile, n_samples
    we, wd = bt * L, bt * n * L

    wenc_r = params["wenc"].reshape(K_LAT + 1, NF, L)
    wdec_r = jnp.transpose(params["wdec"].reshape(NF, L, K_LAT), (2, 0, 1))

    # segment-sum matrix (WE, BT): sums each length-L lane block per batch element
    ssum = (jnp.arange(we)[:, None] // L == jnp.arange(bt)[None, :]
            ).astype(jnp.float32)
    # batch-select matrix (BT, WD): broadcasts per-batch phi onto decoder lanes
    eb = (jnp.arange(bt)[:, None] == jnp.arange(wd)[None, :] // (n * L)
          ).astype(jnp.float32)

    return dict(
        batch_tile=bt, n_samples=n,
        w1s=_stack_conv(params["w1"]), b1c=params["b1"].reshape(NF, 1),
        w2s=_stack_conv(params["w2"]), b2c=params["b2"].reshape(NF, 1),
        w3s=_stack_conv(params["w3"]), b3c=params["b3"].reshape(NF, 1),
        wenc_t=jnp.tile(wenc_r, (1, 1, bt)),
        benc_c=params["benc"].reshape(K_LAT + 1, 1),
        ssum=ssum, eb=eb,
        wdec_t=jnp.tile(wdec_r, (1, 1, bt * n)),
        bdec_t=jnp.tile(params["bdec"].reshape(NF, L), (1, bt * n)),
        wt1s=_stack_conv(_convT_to_conv(params["wt1"])),
        bt1c=params["bt1"].reshape(NF, 1),
        wt2s=_stack_conv(_convT_to_conv(params["wt2"])),
        bt2c=params["bt2"].reshape(NF, 1),
        wt3s=_stack_conv(_convT_to_conv(params["wt3"])),
        bt3c=params["bt3"].reshape(1, 1),
    )


# ---------------- forward wrapper ----------------
def _full_spec(shape):
    nd = len(shape)
    return pl.BlockSpec(shape, lambda i, _nd=nd: (0,) * _nd)


def simple_vae_forward(x, prepped, eps, n=1):
    """forward(x, n): encoder -> rsample -> decode.  Returns (B, n, 1, IMAGE_SIZE).

    eps: (B, n, K) standard-normal draws for the reparameterized sample.
    """
    assert n == prepped["n_samples"]
    p = prepped
    bt = p["batch_tile"]
    B = x.shape[0]
    nblk = -(-B // bt)                 # ceil-div
    bp = nblk * bt
    we, wd = bt * L, bt * n * L

    x2 = x.reshape(B, L).astype(jnp.float32)
    eps = eps.astype(jnp.float32)
    if bp != B:
        x2 = jnp.pad(x2, ((0, bp - B), (0, 0)))
        eps = jnp.pad(eps, ((0, bp - B), (0, 0), (0, 0)))

    x_l = x2.reshape(1, bp * L)                                        # (1, B*L)
    eps_l = jnp.repeat(jnp.transpose(eps.reshape(bp * n, K_LAT)),
                       L, axis=1)                                      # (K, B*n*L)

    weights = (p["w1s"], p["b1c"], p["w2s"], p["b2c"], p["w3s"], p["b3c"],
               p["wenc_t"], p["benc_c"], p["ssum"],
               p["eb"], p["wdec_t"], p["bdec_t"],
               p["wt1s"], p["bt1c"], p["wt2s"], p["bt2c"], p["wt3s"], p["bt3c"])

    in_specs = [pl.BlockSpec((1, we), lambda i: (0, i)),
                pl.BlockSpec((K_LAT, wd), lambda i: (0, i))]
    in_specs += [_full_spec(w.shape) for w in weights]

    out = pl.pallas_call(
        vae_kernel,
        out_shape=jax.ShapeDtypeStruct((1, bp * n * L), jnp.float32),
        grid=(nblk,),
        in_specs=in_specs,
        out_specs=pl.BlockSpec((1, wd), lambda i: (0, i)),
        compiler_params=pltpu.CompilerParams(
            dimension_semantics=("parallel",)),
    )(x_l, eps_l, *weights)

    return out.reshape(bp, n, 1, L)[:B]


# ---------------- pure-JAX reference forward (matmul-free, full f32) ------------
def _conv1d_same_ref(x, w, b):
    """PyTorch Conv1d (cross-correlation), stride 1, padding=PAD.  x: (Ci, L)."""
    xp = jnp.pad(x, ((0, 0), (PAD, PAD)))
    X = jnp.stack([xp[:, j:j + x.shape[1]] for j in range(KS)], axis=1)  # (Ci,KS,L)
    return (w[:, :, :, None] * X[None, :, :, :]).sum(axis=(1, 2)) + b[:, None]


def _convT1d_same_ref(x, wt, b):
    """PyTorch ConvTranspose1d, stride 1, padding=PAD.  x: (Ci, L), wt: (Ci, Co, KS)."""
    xp = jnp.pad(x, ((0, 0), (PAD, PAD)))
    # out[o, p] = sum_{c,j} wt[c, o, j] * x[c, p + PAD - j]
    X = jnp.stack([xp[:, (2 * PAD - j):(2 * PAD - j) + x.shape[1]]
                   for j in range(KS)], axis=1)                          # (Ci,KS,L)
    return (wt[:, :, :, None] * X[:, None, :, :]).sum(axis=(0, 2)) + b[:, None]


def reference_forward(params, x, eps):
    """x: (B, 1, L), eps: (B, n, K) -> (B, n, 1, L)."""
    B = x.shape[0]
    n = eps.shape[1]
    outs = []
    for b in range(B):
        h = x[b].astype(jnp.float32)                                     # (1, L)
        h = jax.nn.relu(_conv1d_same_ref(h, params["w1"], params["b1"]))
        h = jax.nn.relu(_conv1d_same_ref(h, params["w2"], params["b2"]))
        h = jax.nn.relu(_conv1d_same_ref(h, params["w3"], params["b3"]))
        flat = h.reshape(-1)                                             # (NF*L,)
        phi = (params["wenc"] * flat[None, :]).sum(axis=1) + params["benc"]
        mu, log_sig = phi[:K_LAT], phi[K_LAT]
        per_b = []
        for s in range(n):
            z = mu + eps[b, s] * jnp.exp(log_sig)                        # (K,)
            d = (params["wdec"] * z[None, :]).sum(axis=1) + params["bdec"]
            d = jax.nn.relu(d.reshape(NF, L))
            d = jax.nn.relu(_convT1d_same_ref(d, params["wt1"], params["bt1"]))
            d = jax.nn.relu(_convT1d_same_ref(d, params["wt2"], params["bt2"]))
            d = jnp.tanh(_convT1d_same_ref(d, params["wt3"], params["bt3"]))
            per_b.append(d)                                              # (1, L)
        outs.append(jnp.stack(per_b, axis=0))                            # (n, 1, L)
    return jnp.stack(outs, axis=0)                                       # (B, n, 1, L)


# ---------------- deterministic parameter init ----------------
def init_params(key):
    keys = jax.random.split(key, 16)

    def w(k, shape, scale=0.05):
        return (scale * jax.random.normal(k, shape)).astype(jnp.float32)

    return dict(
        w1=w(keys[0], (NF, 1, KS)),        b1=w(keys[1], (NF,)),
        w2=w(keys[2], (NF, NF, KS)),       b2=w(keys[3], (NF,)),
        w3=w(keys[4], (NF, NF, KS)),       b3=w(keys[5], (NF,)),
        wenc=w(keys[6], (K_LAT + 1, NF * L)), benc=w(keys[7], (K_LAT + 1,)),
        wdec=w(keys[8], (NF * L, K_LAT)),  bdec=w(keys[9], (NF * L,)),
        wt1=w(keys[10], (NF, NF, KS)),     bt1=w(keys[11], (NF,)),
        wt2=w(keys[12], (NF, NF, KS)),     bt2=w(keys[13], (NF,)),
        wt3=w(keys[14], (NF, 1, KS)),      bt3=w(keys[15], (1,)),
    )


if __name__ == "__main__":
    key = jax.random.PRNGKey(0)
    kp, kx, kz = jax.random.split(key, 3)
    params = init_params(kp)

    B, n = 2, 2
    x = jax.random.normal(kx, (B, CHANNELS, SEQ_LEN), dtype=jnp.float32)  # NCL
    # TODO(synk): torch.randn's bit-stream is not reproducible in JAX; eps is
    # drawn deterministically with jax.random instead (same distribution).
    eps = jax.random.normal(kz, (B, n, K_LAT), dtype=jnp.float32)

    prepped = prepare_params(params, batch_tile=min(B, 8), n_samples=n)
    fwd = jax.jit(lambda x_, e_: simple_vae_forward(x_, prepped, e_, n=n))
    out = jax.block_until_ready(fwd(x, eps))

    assert out.shape == (B, n, 1, IMAGE_SIZE) and out.dtype == jnp.float32
    assert bool(jnp.all(jnp.isfinite(out)))

    ref = reference_forward(params, x, eps)
    rel_err = float(jnp.linalg.norm(out - ref) / (jnp.linalg.norm(ref) + 1e-12))
    assert rel_err < 0.05, f"kernel/reference mismatch: rel L2 err = {rel_err}"

    print("KERNEL_OK")
</pallas_src>

<mosaic_0001>
module attributes {stable_mosaic.version = 11 : i64} {
  func.func @vae_kernel(%arg0: i32, %arg1: memref<1x256xf32, #tpu.memory_space<vmem>>, %arg2: memref<2x512xf32, #tpu.memory_space<vmem>>, %arg3: memref<8x5xf32, #tpu.memory_space<vmem>>, %arg4: memref<8x1xf32, #tpu.memory_space<vmem>>, %arg5: memref<8x40xf32, #tpu.memory_space<vmem>>, %arg6: memref<8x1xf32, #tpu.memory_space<vmem>>, %arg7: memref<8x40xf32, #tpu.memory_space<vmem>>, %arg8: memref<8x1xf32, #tpu.memory_space<vmem>>, %arg9: memref<3x8x256xf32, #tpu.memory_space<vmem>>, %arg10: memref<3x1xf32, #tpu.memory_space<vmem>>, %arg11: memref<256x2xf32, #tpu.memory_space<vmem>>, %arg12: memref<2x512xf32, #tpu.memory_space<vmem>>, %arg13: memref<2x8x512xf32, #tpu.memory_space<vmem>>, %arg14: memref<8x512xf32, #tpu.memory_space<vmem>>, %arg15: memref<8x40xf32, #tpu.memory_space<vmem>>, %arg16: memref<8x1xf32, #tpu.memory_space<vmem>>, %arg17: memref<8x40xf32, #tpu.memory_space<vmem>>, %arg18: memref<8x1xf32, #tpu.memory_space<vmem>>, %arg19: memref<1x40xf32, #tpu.memory_space<vmem>>, %arg20: memref<1x1xf32, #tpu.memory_space<vmem>>, %arg21: memref<1x512xf32, #tpu.memory_space<vmem>>) attributes {dimension_semantics = [#tpu.dimension_semantics<parallel>], iteration_bounds = array<i64: 1>, scalar_prefetch = 0 : i64, scratch_operands = 0 : i64, tpu.core_type = #tpu.core_type<tc>, window_params = [{transform_indices = @transform_0, window_bounds = array<i64: 1, 256>}, {transform_indices = @transform_1, window_bounds = array<i64: 2, 512>}, {pipeline_mode = #tpu.pipeline_mode<synchronous>, transform_indices = @transform_2, window_bounds = array<i64: 8, 5>}, {pipeline_mode = #tpu.pipeline_mode<synchronous>, transform_indices = @transform_3, window_bounds = array<i64: 8, 1>}, {pipeline_mode = #tpu.pipeline_mode<synchronous>, transform_indices = @transform_4, window_bounds = array<i64: 8, 40>}, {pipeline_mode = #tpu.pipeline_mode<synchronous>, transform_indices = @transform_5, window_bounds = array<i64: 8, 1>}, {pipeline_mode = #tpu.pipeline_mode<synchronous>, transform_indices = @transform_6, window_bounds = array<i64: 8, 40>}, {pipeline_mode = #tpu.pipeline_mode<synchronous>, transform_indices = @transform_7, window_bounds = array<i64: 8, 1>}, {pipeline_mode = #tpu.pipeline_mode<synchronous>, transform_indices = @transform_8, window_bounds = array<i64: 3, 8, 256>}, {pipeline_mode = #tpu.pipeline_mode<synchronous>, transform_indices = @transform_9, window_bounds = array<i64: 3, 1>}, {pipeline_mode = #tpu.pipeline_mode<synchronous>, transform_indices = @transform_10, window_bounds = array<i64: 256, 2>}, {pipeline_mode = #tpu.pipeline_mode<synchronous>, transform_indices = @transform_11, window_bounds = array<i64: 2, 512>}, {pipeline_mode = #tpu.pipeline_mode<synchronous>, transform_indices = @transform_12, window_bounds = array<i64: 2, 8, 512>}, {pipeline_mode = #tpu.pipeline_mode<synchronous>, transform_indices = @transform_13, window_bounds = array<i64: 8, 512>}, {pipeline_mode = #tpu.pipeline_mode<synchronous>, transform_indices = @transform_14, window_bounds = array<i64: 8, 40>}, {pipeline_mode = #tpu.pipeline_mode<synchronous>, transform_indices = @transform_15, window_bounds = array<i64: 8, 1>}, {pipeline_mode = #tpu.pipeline_mode<synchronous>, transform_indices = @transform_16, window_bounds = array<i64: 8, 40>}, {pipeline_mode = #tpu.pipeline_mode<synchronous>, transform_indices = @transform_17, window_bounds = array<i64: 8, 1>}, {pipeline_mode = #tpu.pipeline_mode<synchronous>, transform_indices = @transform_18, window_bounds = array<i64: 1, 40>}, {pipeline_mode = #tpu.pipeline_mode<synchronous>, transform_indices = @transform_19, window_bounds = array<i64: 1, 1>}, {transform_indices = @transform_20, window_bounds = array<i64: 1, 512>}]} {
    %0 = tpu.iota {dimensions = array<i32: 1>} : vector<1x256xi32>
    %c128_i32 = arith.constant 128 : i32
    %c0_i32 = arith.constant 0 : i32
    %1 = arith.cmpi eq, %c128_i32, %c0_i32 : i32
    %c1_i32 = arith.constant 1 : i32
    %2 = arith.select %1, %c1_i32, %c128_i32 : i32
    %3 = vector.broadcast %2 : i32 to vector<1x256xi32>
    %4 = arith.remsi %0, %3 : vector<1x256xi32>
    %c0_i32_0 = arith.constant 0 : i32
    %5 = vector.broadcast %c0_i32_0 : i32 to vector<1x256xi32>
    %6 = arith.cmpi ne, %4, %5 : vector<1x256xi32>
    %c0_i32_1 = arith.constant 0 : i32
    %7 = vector.broadcast %c0_i32_1 : i32 to vector<1x256xi32>
    %8 = arith.cmpi slt, %4, %7 : vector<1x256xi32>
    %c0_i32_2 = arith.constant 0 : i32
    %9 = arith.cmpi slt, %2, %c0_i32_2 : i32
    %10 = vector.broadcast %9 : i1 to vector<1x256xi1>
    %11 = vector.broadcast %10 : vector<1x256xi1> to vector<1x256xi1>
    %12 = arith.xori %8, %11 : vector<1x256xi1>
    %13 = arith.andi %12, %6 : vector<1x256xi1>
    %14 = vector.broadcast %2 : i32 to vector<1x256xi32>
    %15 = arith.addi %4, %14 : vector<1x256xi32>
    %16 = arith.select %13, %15, %4 : vector<1x256xi1>, vector<1x256xi32>
    %c2_i32 = arith.constant 2 : i32
    %17 = vector.broadcast %c2_i32 : i32 to vector<1x256xi32>
    %18 = arith.cmpi sge, %16, %17 : vector<1x256xi32>
    %c1_i32_3 = arith.constant 1 : i32
    %19 = vector.broadcast %c1_i32_3 : i32 to vector<1x256xi32>
    %20 = arith.cmpi sge, %16, %19 : vector<1x256xi32>
    %c127_i32 = arith.constant 127 : i32
    %21 = vector.broadcast %c127_i32 : i32 to vector<1x256xi32>
    %22 = arith.cmpi slt, %16, %21 : vector<1x256xi32>
    %c126_i32 = arith.constant 126 : i32
    %23 = vector.broadcast %c126_i32 : i32 to vector<1x256xi32>
    %24 = arith.cmpi slt, %16, %23 : vector<1x256xi32>
    %25 = tpu.iota {dimensions = array<i32: 1>} : vector<1x512xi32>
    %c128_i32_4 = arith.constant 128 : i32
    %c0_i32_5 = arith.constant 0 : i32
    %26 = arith.cmpi eq, %c128_i32_4, %c0_i32_5 : i32
    %c1_i32_6 = arith.constant 1 : i32
    %27 = arith.select %26, %c1_i32_6, %c128_i32_4 : i32
    %28 = vector.broadcast %27 : i32 to vector<1x512xi32>
    %29 = arith.remsi %25, %28 : vector<1x512xi32>
    %c0_i32_7 = arith.constant 0 : i32
    %30 = vector.broadcast %c0_i32_7 : i32 to vector<1x512xi32>
    %31 = arith.cmpi ne, %29, %30 : vector<1x512xi32>
    %c0_i32_8 = arith.constant 0 : i32
    %32 = vector.broadcast %c0_i32_8 : i32 to vector<1x512xi32>
    %33 = arith.cmpi slt, %29, %32 : vector<1x512xi32>
    %c0_i32_9 = arith.constant 0 : i32
    %34 = arith.cmpi slt, %27, %c0_i32_9 : i32
    %35 = vector.broadcast %34 : i1 to vector<1x512xi1>
    %36 = vector.broadcast %35 : vector<1x512xi1> to vector<1x512xi1>
    %37 = arith.xori %33, %36 : vector<1x512xi1>
    %38 = arith.andi %37, %31 : vector<1x512xi1>
    %39 = vector.broadcast %27 : i32 to vector<1x512xi32>
    %40 = arith.addi %29, %39 : vector<1x512xi32>
    %41 = arith.select %38, %40, %29 : vector<1x512xi1>, vector<1x512xi32>
    %c2_i32_10 = arith.constant 2 : i32
    %42 = vector.broadcast %c2_i32_10 : i32 to vector<1x512xi32>
    %43 = arith.cmpi sge, %41, %42 : vector<1x512xi32>
    %c1_i32_11 = arith.constant 1 : i32
    %44 = vector.broadcast %c1_i32_11 : i32 to vector<1x512xi32>
    %45 = arith.cmpi sge, %41, %44 : vector<1x512xi32>
    %c127_i32_12 = arith.constant 127 : i32
    %46 = vector.broadcast %c127_i32_12 : i32 to vector<1x512xi32>
    %47 = arith.cmpi slt, %41, %46 : vector<1x512xi32>
    %c126_i32_13 = arith.constant 126 : i32
    %48 = vector.broadcast %c126_i32_13 : i32 to vector<1x512xi32>
    %49 = arith.cmpi slt, %41, %48 : vector<1x512xi32>
    %c0 = arith.constant 0 : index
    %c0_14 = arith.constant 0 : index
    %50 = vector.load %arg1[%c0, %c0_14] : memref<1x256xf32, #tpu.memory_space<vmem>>, vector<1x256xf32>
    %c0_15 = arith.constant 0 : index
    %c0_16 = arith.constant 0 : index
    %51 = vector.load %arg3[%c0_15, %c0_16] : memref<8x5xf32, #tpu.memory_space<vmem>>, vector<8x5xf32>
    %c0_17 = arith.constant 0 : index
    %c0_18 = arith.constant 0 : index
    %52 = vector.load %arg4[%c0_17, %c0_18] : memref<8x1xf32, #tpu.memory_space<vmem>>, vector<8x1xf32>
    %c2_i32_19 = arith.constant 2 : i32
    %53 = tpu.dynamic_rotate %50 by %c2_i32_19 dim 1 : vector<1x256xf32>, i32 -> vector<1x256xf32>
    %cst = arith.constant 0.000000e+00 : f32
    %54 = vector.broadcast %cst : f32 to vector<1x256xf32>
    %55 = arith.select %18, %53, %54 : vector<1x256xi1>, vector<1x256xf32>
    %c1_i32_20 = arith.constant 1 : i32
    %56 = tpu.dynamic_rotate %50 by %c1_i32_20 dim 1 : vector<1x256xf32>, i32 -> vector<1x256xf32>
    %cst_21 = arith.constant 0.000000e+00 : f32
    %57 = vector.broadcast %cst_21 : f32 to vector<1x256xf32>
    %58 = arith.select %20, %56, %57 : vector<1x256xi1>, vector<1x256xf32>
    %c255_i32 = arith.constant 255 : i32
    %59 = tpu.dynamic_rotate %50 by %c255_i32 dim 1 : vector<1x256xf32>, i32 -> vector<1x256xf32>
    %cst_22 = arith.constant 0.000000e+00 : f32
    %60 = vector.broadcast %cst_22 : f32 to vector<1x256xf32>
    %61 = arith.select %22, %59, %60 : vector<1x256xi1>, vector<1x256xf32>
    %c254_i32 = arith.constant 254 : i32
    %62 = tpu.dynamic_rotate %50 by %c254_i32 dim 1 : vector<1x256xf32>, i32 -> vector<1x256xf32>
    %cst_23 = arith.constant 0.000000e+00 : f32
    %63 = vector.broadcast %cst_23 : f32 to vector<1x256xf32>
    %64 = arith.select %24, %62, %63 : vector<1x256xi1>, vector<1x256xf32>
    %65 = tpu.concatenate %55, %58, %50, %61, %64 in 0 : vector<1x256xf32>, vector<1x256xf32>, vector<1x256xf32>, vector<1x256xf32>, vector<1x256xf32> -> vector<5x256xf32>
    %cst_24 = arith.constant dense<0.000000e+00> : vector<8x256xf32>
    %66 = tpu.matmul %51, %65, %cst_24 {dimension_numbers = #tpu.dot_dimension_numbers<[1], [0], [0], [1], [0, 0, 1, 1], [], []>} : vector<8x5xf32>, vector<5x256xf32>, vector<8x256xf32> -> vector<8x256xf32>
    %67 = vector.broadcast %52 : vector<8x1xf32> to vector<8x256xf32>
    %68 = arith.addf %66, %67 : vector<8x256xf32>
    %cst_25 = arith.constant 0.000000e+00 : f32
    %69 = vector.broadcast %cst_25 : f32 to vector<8x256xf32>
    %70 = arith.maximumf %68, %69 : vector<8x256xf32>
    %c0_26 = arith.constant 0 : index
    %c0_27 = arith.constant 0 : index
    %71 = vector.load %arg5[%c0_26, %c0_27] : memref<8x40xf32, #tpu.memory_space<vmem>>, vector<8x40xf32>
    %c0_28 = arith.constant 0 : index
    %c0_29 = arith.constant 0 : index
    %72 = vector.load %arg6[%c0_28, %c0_29] : memref<8x1xf32, #tpu.memory_space<vmem>>, vector<8x1xf32>
    %c2_i32_30 = arith.constant 2 : i32
    %73 = tpu.dynamic_rotate %70 by %c2_i32_30 dim 1 : vector<8x256xf32>, i32 -> vector<8x256xf32>
    %cst_31 = arith.constant 0.000000e+00 : f32
    %74 = vector.shape_cast %18 : vector<1x256xi1> to vector<1x256xi1>
    %75 = vector.broadcast %74 : vector<1x256xi1> to vector<8x256xi1>
    %76 = vector.broadcast %cst_31 : f32 to vector<8x256xf32>
    %77 = arith.select %75, %73, %76 : vector<8x256xi1>, vector<8x256xf32>
    %c1_i32_32 = arith.constant 1 : i32
    %78 = tpu.dynamic_rotate %70 by %c1_i32_32 dim 1 : vector<8x256xf32>, i32 -> vector<8x256xf32>
    %cst_33 = arith.constant 0.000000e+00 : f32
    %79 = vector.shape_cast %20 : vector<1x256xi1> to vector<1x256xi1>
    %80 = vector.broadcast %79 : vector<1x256xi1> to vector<8x256xi1>
    %81 = vector.broadcast %cst_33 : f32 to vector<8x256xf32>
    %82 = arith.select %80, %78, %81 : vector<8x256xi1>, vector<8x256xf32>
    %c255_i32_34 = arith.constant 255 : i32
    %83 = tpu.dynamic_rotate %70 by %c255_i32_34 dim 1 : vector<8x256xf32>, i32 -> vector<8x256xf32>
    %cst_35 = arith.constant 0.000000e+00 : f32
    %84 = vector.shape_cast %22 : vector<1x256xi1> to vector<1x256xi1>
    %85 = vector.broadcast %84 : vector<1x256xi1> to vector<8x256xi1>
    %86 = vector.broadcast %cst_35 : f32 to vector<8x256xf32>
    %87 = arith.select %85, %83, %86 : vector<8x256xi1>, vector<8x256xf32>
    %c254_i32_36 = arith.constant 254 : i32
    %88 = tpu.dynamic_rotate %70 by %c254_i32_36 dim 1 : vector<8x256xf32>, i32 -> vector<8x256xf32>
    %cst_37 = arith.constant 0.000000e+00 : f32
    %89 = vector.shape_cast %24 : vector<1x256xi1> to vector<1x256xi1>
    %90 = vector.broadcast %89 : vector<1x256xi1> to vector<8x256xi1>
    %91 = vector.broadcast %cst_37 : f32 to vector<8x256xf32>
    %92 = arith.select %90, %88, %91 : vector<8x256xi1>, vector<8x256xf32>
    %93 = tpu.concatenate %77, %82, %70, %87, %92 in 0 : vector<8x256xf32>, vector<8x256xf32>, vector<8x256xf32>, vector<8x256xf32>, vector<8x256xf32> -> vector<40x256xf32>
    %cst_38 = arith.constant dense<0.000000e+00> : vector<8x256xf32>
    %94 = tpu.matmul %71, %93, %cst_38 {dimension_numbers = #tpu.dot_dimension_numbers<[1], [0], [0], [1], [0, 0, 1, 1], [], []>} : vector<8x40xf32>, vector<40x256xf32>, vector<8x256xf32> -> vector<8x256xf32>
    %95 = vector.broadcast %72 : vector<8x1xf32> to vector<8x256xf32>
    %96 = arith.addf %94, %95 : vector<8x256xf32>
    %cst_39 = arith.constant 0.000000e+00 : f32
    %97 = vector.broadcast %cst_39 : f32 to vector<8x256xf32>
    %98 = arith.maximumf %96, %97 : vector<8x256xf32>
    %c0_40 = arith.constant 0 : index
    %c0_41 = arith.constant 0 : index
    %99 = vector.load %arg7[%c0_40, %c0_41] : memref<8x40xf32, #tpu.memory_space<vmem>>, vector<8x40xf32>
    %c0_42 = arith.constant 0 : index
    %c0_43 = arith.constant 0 : index
    %100 = vector.load %arg8[%c0_42, %c0_43] : memref<8x1xf32, #tpu.memory_space<vmem>>, vector<8x1xf32>
    %c2_i32_44 = arith.constant 2 : i32
    %101 = tpu.dynamic_rotate %98 by %c2_i32_44 dim 1 : vector<8x256xf32>, i32 -> vector<8x256xf32>
    %cst_45 = arith.constant 0.000000e+00 : f32
    %102 = vector.shape_cast %18 : vector<1x256xi1> to vector<1x256xi1>
    %103 = vector.broadcast %102 : vector<1x256xi1> to vector<8x256xi1>
    %104 = vector.broadcast %cst_45 : f32 to vector<8x256xf32>
    %105 = arith.select %103, %101, %104 : vector<8x256xi1>, vector<8x256xf32>
    %c1_i32_46 = arith.constant 1 : i32
    %106 = tpu.dynamic_rotate %98 by %c1_i32_46 dim 1 : vector<8x256xf32>, i32 -> vector<8x256xf32>
    %cst_47 = arith.constant 0.000000e+00 : f32
    %107 = vector.shape_cast %20 : vector<1x256xi1> to vector<1x256xi1>
    %108 = vector.broadcast %107 : vector<1x256xi1> to vector<8x256xi1>
    %109 = vector.broadcast %cst_47 : f32 to vector<8x256xf32>
    %110 = arith.select %108, %106, %109 : vector<8x256xi1>, vector<8x256xf32>
    %c255_i32_48 = arith.constant 255 : i32
    %111 = tpu.dynamic_rotate %98 by %c255_i32_48 dim 1 : vector<8x256xf32>, i32 -> vector<8x256xf32>
    %cst_49 = arith.constant 0.000000e+00 : f32
    %112 = vector.shape_cast %22 : vector<1x256xi1> to vector<1x256xi1>
    %113 = vector.broadcast %112 : vector<1x256xi1> to vector<8x256xi1>
    %114 = vector.broadcast %cst_49 : f32 to vector<8x256xf32>
    %115 = arith.select %113, %111, %114 : vector<8x256xi1>, vector<8x256xf32>
    %c254_i32_50 = arith.constant 254 : i32
    %116 = tpu.dynamic_rotate %98 by %c254_i32_50 dim 1 : vector<8x256xf32>, i32 -> vector<8x256xf32>
    %cst_51 = arith.constant 0.000000e+00 : f32
    %117 = vector.shape_cast %24 : vector<1x256xi1> to vector<1x256xi1>
    %118 = vector.broadcast %117 : vector<1x256xi1> to vector<8x256xi1>
    %119 = vector.broadcast %cst_51 : f32 to vector<8x256xf32>
    %120 = arith.select %118, %116, %119 : vector<8x256xi1>, vector<8x256xf32>
    %121 = tpu.concatenate %105, %110, %98, %115, %120 in 0 : vector<8x256xf32>, vector<8x256xf32>, vector<8x256xf32>, vector<8x256xf32>, vector<8x256xf32> -> vector<40x256xf32>
    %cst_52 = arith.constant dense<0.000000e+00> : vector<8x256xf32>
    %122 = tpu.matmul %99, %121, %cst_52 {dimension_numbers = #tpu.dot_dimension_numbers<[1], [0], [0], [1], [0, 0, 1, 1], [], []>} : vector<8x40xf32>, vector<40x256xf32>, vector<8x256xf32> -> vector<8x256xf32>
    %123 = vector.broadcast %100 : vector<8x1xf32> to vector<8x256xf32>
    %124 = arith.addf %122, %123 : vector<8x256xf32>
    %cst_53 = arith.constant 0.000000e+00 : f32
    %125 = vector.broadcast %cst_53 : f32 to vector<8x256xf32>
    %126 = arith.maximumf %124, %125 : vector<8x256xf32>
    %c0_54 = arith.constant 0 : index
    %c0_55 = arith.constant 0 : index
    %c0_56 = arith.constant 0 : index
    %127 = vector.load %arg9[%c0_54, %c0_55, %c0_56] : memref<3x8x256xf32, #tpu.memory_space<vmem>>, vector<1x8x256xf32>
    %128 = vector.shape_cast %127 : vector<1x8x256xf32> to vector<8x256xf32>
    %129 = arith.mulf %128, %126 : vector<8x256xf32>
    %cst_57 = arith.constant dense<0.000000e+00> : vector<256xf32>
    %130 = vector.multi_reduction <add>, %129, %cst_57 [0] : vector<8x256xf32> to vector<256xf32>
    %131 = vector.shape_cast %130 : vector<256xf32> to vector<1x256xf32>
    %c1 = arith.constant 1 : index
    %c0_58 = arith.constant 0 : index
    %c0_59 = arith.constant 0 : index
    %132 = vector.load %arg9[%c1, %c0_58, %c0_59] : memref<3x8x256xf32, #tpu.memory_space<vmem>>, vector<1x8x256xf32>
    %133 = vector.shape_cast %132 : vector<1x8x256xf32> to vector<8x256xf32>
    %134 = arith.mulf %133, %126 : vector<8x256xf32>
    %cst_60 = arith.constant dense<0.000000e+00> : vector<256xf32>
    %135 = vector.multi_reduction <add>, %134, %cst_60 [0] : vector<8x256xf32> to vector<256xf32>
    %136 = vector.shape_cast %135 : vector<256xf32> to vector<1x256xf32>
    %c2 = arith.constant 2 : index
    %c0_61 = arith.constant 0 : index
    %c0_62 = arith.constant 0 : index
    %137 = vector.load %arg9[%c2, %c0_61, %c0_62] : memref<3x8x256xf32, #tpu.memory_space<vmem>>, vector<1x8x256xf32>
    %138 = vector.shape_cast %137 : vector<1x8x256xf32> to vector<8x256xf32>
    %139 = arith.mulf %138, %126 : vector<8x256xf32>
    %cst_63 = arith.constant dense<0.000000e+00> : vector<256xf32>
    %140 = vector.multi_reduction <add>, %139, %cst_63 [0] : vector<8x256xf32> to vector<256xf32>
    %141 = vector.shape_cast %140 : vector<256xf32> to vector<1x256xf32>
    %142 = tpu.concatenate %131, %136, %141 in 0 : vector<1x256xf32>, vector<1x256xf32>, vector<1x256xf32> -> vector<3x256xf32>
    %c0_64 = arith.constant 0 : index
    %c0_65 = arith.constant 0 : index
    %143 = vector.load %arg11[%c0_64, %c0_65] : memref<256x2xf32, #tpu.memory_space<vmem>>, vector<256x2xf32>
    %cst_66 = arith.constant dense<0.000000e+00> : vector<3x2xf32>
    %144 = tpu.matmul %142, %143, %cst_66 {dimension_numbers = #tpu.dot_dimension_numbers<[1], [0], [0], [1], [0, 0, 1, 1], [], []>} : vector<3x256xf32>, vector<256x2xf32>, vector<3x2xf32> -> vector<3x2xf32>
    %c0_67 = arith.constant 0 : index
    %c0_68 = arith.constant 0 : index
    %145 = vector.load %arg10[%c0_67, %c0_68] : memref<3x1xf32, #tpu.memory_space<vmem>>, vector<3x1xf32>
    %146 = vector.broadcast %145 : vector<3x1xf32> to vector<3x2xf32>
    %147 = arith.addf %144, %146 : vector<3x2xf32>
    %c0_69 = arith.constant 0 : index
    %c0_70 = arith.constant 0 : index
    %148 = vector.load %arg12[%c0_69, %c0_70] : memref<2x512xf32, #tpu.memory_space<vmem>>, vector<2x512xf32>
    %cst_71 = arith.constant dense<0.000000e+00> : vector<3x512xf32>
    %149 = tpu.matmul %147, %148, %cst_71 {dimension_numbers = #tpu.dot_dimension_numbers<[1], [0], [0], [1], [0, 0, 1, 1], [], []>} : vector<3x2xf32>, vector<2x512xf32>, vector<3x512xf32> -> vector<3x512xf32>
    %150 = vector.extract_strided_slice %149 {offsets = [2, 0], sizes = [1, 512], strides = [1, 1]} : vector<3x512xf32> to vector<1x512xf32>
    %151 = math.exp %150 : vector<1x512xf32>
    %152 = vector.extract_strided_slice %149 {offsets = [0, 0], sizes = [2, 512], strides = [1, 1]} : vector<3x512xf32> to vector<2x512xf32>
    %c0_72 = arith.constant 0 : index
    %c0_73 = arith.constant 0 : index
    %153 = vector.load %arg2[%c0_72, %c0_73] : memref<2x512xf32, #tpu.memory_space<vmem>>, vector<2x512xf32>
    %154 = vector.broadcast %151 : vector<1x512xf32> to vector<2x512xf32>
    %155 = arith.mulf %153, %154 : vector<2x512xf32>
    %156 = arith.addf %152, %155 : vector<2x512xf32>
    %c0_74 = arith.constant 0 : index
    %c0_75 = arith.constant 0 : index
    %157 = vector.load %arg14[%c0_74, %c0_75] : memref<8x512xf32, #tpu.memory_space<vmem>>, vector<8x512xf32>
    %158 = vector.extract_strided_slice %156 {offsets = [0, 0], sizes = [1, 512], strides = [1, 1]} : vector<2x512xf32> to vector<1x512xf32>
    %c0_76 = arith.constant 0 : index
    %c0_77 = arith.constant 0 : index
    %c0_78 = arith.constant 0 : index
    %159 = vector.load %arg13[%c0_76, %c0_77, %c0_78] : memref<2x8x512xf32, #tpu.memory_space<vmem>>, vector<1x8x512xf32>
    %160 = vector.shape_cast %159 : vector<1x8x512xf32> to vector<8x512xf32>
    %161 = vector.broadcast %158 : vector<1x512xf32> to vector<8x512xf32>
    %162 = arith.mulf %161, %160 : vector<8x512xf32>
    %163 = arith.addf %157, %162 : vector<8x512xf32>
    %164 = vector.extract_strided_slice %156 {offsets = [1, 0], sizes = [1, 512], strides = [1, 1]} : vector<2x512xf32> to vector<1x512xf32>
    %c1_79 = arith.constant 1 : index
    %c0_80 = arith.constant 0 : index
    %c0_81 = arith.constant 0 : index
    %165 = vector.load %arg13[%c1_79, %c0_80, %c0_81] : memref<2x8x512xf32, #tpu.memory_space<vmem>>, vector<1x8x512xf32>
    %166 = vector.shape_cast %165 : vector<1x8x512xf32> to vector<8x512xf32>
    %167 = vector.broadcast %164 : vector<1x512xf32> to vector<8x512xf32>
    %168 = arith.mulf %167, %166 : vector<8x512xf32>
    %169 = arith.addf %163, %168 : vector<8x512xf32>
    %cst_82 = arith.constant 0.000000e+00 : f32
    %170 = vector.broadcast %cst_82 : f32 to vector<8x512xf32>
    %171 = arith.maximumf %169, %170 : vector<8x512xf32>
    %c0_83 = arith.constant 0 : index
    %c0_84 = arith.constant 0 : index
    %172 = vector.load %arg15[%c0_83, %c0_84] : memref<8x40xf32, #tpu.memory_space<vmem>>, vector<8x40xf32>
    %c0_85 = arith.constant 0 : index
    %c0_86 = arith.constant 0 : index
    %173 = vector.load %arg16[%c0_85, %c0_86] : memref<8x1xf32, #tpu.memory_space<vmem>>, vector<8x1xf32>
    %c2_i32_87 = arith.constant 2 : i32
    %174 = tpu.dynamic_rotate %171 by %c2_i32_87 dim 1 : vector<8x512xf32>, i32 -> vector<8x512xf32>
    %cst_88 = arith.constant 0.000000e+00 : f32
    %175 = vector.shape_cast %43 : vector<1x512xi1> to vector<1x512xi1>
    %176 = vector.broadcast %175 : vector<1x512xi1> to vector<8x512xi1>
    %177 = vector.broadcast %cst_88 : f32 to vector<8x512xf32>
    %178 = arith.select %176, %174, %177 : vector<8x512xi1>, vector<8x512xf32>
    %c1_i32_89 = arith.constant 1 : i32
    %179 = tpu.dynamic_rotate %171 by %c1_i32_89 dim 1 : vector<8x512xf32>, i32 -> vector<8x512xf32>
    %cst_90 = arith.constant 0.000000e+00 : f32
    %180 = vector.shape_cast %45 : vector<1x512xi1> to vector<1x512xi1>
    %181 = vector.broadcast %180 : vector<1x512xi1> to vector<8x512xi1>
    %182 = vector.broadcast %cst_90 : f32 to vector<8x512xf32>
    %183 = arith.select %181, %179, %182 : vector<8x512xi1>, vector<8x512xf32>
    %c511_i32 = arith.constant 511 : i32
    %184 = tpu.dynamic_rotate %171 by %c511_i32 dim 1 : vector<8x512xf32>, i32 -> vector<8x512xf32>
    %cst_91 = arith.constant 0.000000e+00 : f32
    %185 = vector.shape_cast %47 : vector<1x512xi1> to vector<1x512xi1>
    %186 = vector.broadcast %185 : vector<1x512xi1> to vector<8x512xi1>
    %187 = vector.broadcast %cst_91 : f32 to vector<8x512xf32>
    %188 = arith.select %186, %184, %187 : vector<8x512xi1>, vector<8x512xf32>
    %c510_i32 = arith.constant 510 : i32
    %189 = tpu.dynamic_rotate %171 by %c510_i32 dim 1 : vector<8x512xf32>, i32 -> vector<8x512xf32>
    %cst_92 = arith.constant 0.000000e+00 : f32
    %190 = vector.shape_cast %49 : vector<1x512xi1> to vector<1x512xi1>
    %191 = vector.broadcast %190 : vector<1x512xi1> to vector<8x512xi1>
    %192 = vector.broadcast %cst_92 : f32 to vector<8x512xf32>
    %193 = arith.select %191, %189, %192 : vector<8x512xi1>, vector<8x512xf32>
    %194 = tpu.concatenate %178, %183, %171, %188, %193 in 0 : vector<8x512xf32>, vector<8x512xf32>, vector<8x512xf32>, vector<8x512xf32>, vector<8x512xf32> -> vector<40x512xf32>
    %cst_93 = arith.constant dense<0.000000e+00> : vector<8x512xf32>
    %195 = tpu.matmul %172, %194, %cst_93 {dimension_numbers = #tpu.dot_dimension_numbers<[1], [0], [0], [1], [0, 0, 1, 1], [], []>} : vector<8x40xf32>, vector<40x512xf32>, vector<8x512xf32> -> vector<8x512xf32>
    %196 = vector.broadcast %173 : vector<8x1xf32> to vector<8x512xf32>
    %197 = arith.addf %195, %196 : vector<8x512xf32>
    %cst_94 = arith.constant 0.000000e+00 : f32
    %198 = vector.broadcast %cst_94 : f32 to vector<8x512xf32>
    %199 = arith.maximumf %197, %198 : vector<8x512xf32>
    %c0_95 = arith.constant 0 : index
    %c0_96 = arith.constant 0 : index
    %200 = vector.load %arg17[%c0_95, %c0_96] : memref<8x40xf32, #tpu.memory_space<vmem>>, vector<8x40xf32>
    %c0_97 = arith.constant 0 : index
    %c0_98 = arith.constant 0 : index
    %201 = vector.load %arg18[%c0_97, %c0_98] : memref<8x1xf32, #tpu.memory_space<vmem>>, vector<8x1xf32>
    %c2_i32_99 = arith.constant 2 : i32
    %202 = tpu.dynamic_rotate %199 by %c2_i32_99 dim 1 : vector<8x512xf32>, i32 -> vector<8x512xf32>
    %cst_100 = arith.constant 0.000000e+00 : f32
    %203 = vector.shape_cast %43 : vector<1x512xi1> to vector<1x512xi1>
    %204 = vector.broadcast %203 : vector<1x512xi1> to vector<8x512xi1>
    %205 = vector.broadcast %cst_100 : f32 to vector<8x512xf32>
    %206 = arith.select %204, %202, %205 : vector<8x512xi1>, vector<8x512xf32>
    %c1_i32_101 = arith.constant 1 : i32
    %207 = tpu.dynamic_rotate %199 by %c1_i32_101 dim 1 : vector<8x512xf32>, i32 -> vector<8x512xf32>
    %cst_102 = arith.constant 0.000000e+00 : f32
    %208 = vector.shape_cast %45 : vector<1x512xi1> to vector<1x512xi1>
    %209 = vector.broadcast %208 : vector<1x512xi1> to vector<8x512xi1>
    %210 = vector.broadcast %cst_102 : f32 to vector<8x512xf32>
    %211 = arith.select %209, %207, %210 : vector<8x512xi1>, vector<8x512xf32>
    %c511_i32_103 = arith.constant 511 : i32
    %212 = tpu.dynamic_rotate %199 by %c511_i32_103 dim 1 : vector<8x512xf32>, i32 -> vector<8x512xf32>
    %cst_104 = arith.constant 0.000000e+00 : f32
    %213 = vector.shape_cast %47 : vector<1x512xi1> to vector<1x512xi1>
    %214 = vector.broadcast %213 : vector<1x512xi1> to vector<8x512xi1>
    %215 = vector.broadcast %cst_104 : f32 to vector<8x512xf32>
    %216 = arith.select %214, %212, %215 : vector<8x512xi1>, vector<8x512xf32>
    %c510_i32_105 = arith.constant 510 : i32
    %217 = tpu.dynamic_rotate %199 by %c510_i32_105 dim 1 : vector<8x512xf32>, i32 -> vector<8x512xf32>
    %cst_106 = arith.constant 0.000000e+00 : f32
    %218 = vector.shape_cast %49 : vector<1x512xi1> to vector<1x512xi1>
    %219 = vector.broadcast %218 : vector<1x512xi1> to vector<8x512xi1>
    %220 = vector.broadcast %cst_106 : f32 to vector<8x512xf32>
    %221 = arith.select %219, %217, %220 : vector<8x512xi1>, vector<8x512xf32>
    %222 = tpu.concatenate %206, %211, %199, %216, %221 in 0 : vector<8x512xf32>, vector<8x512xf32>, vector<8x512xf32>, vector<8x512xf32>, vector<8x512xf32> -> vector<40x512xf32>
    %cst_107 = arith.constant dense<0.000000e+00> : vector<8x512xf32>
    %223 = tpu.matmul %200, %222, %cst_107 {dimension_numbers = #tpu.dot_dimension_numbers<[1], [0], [0], [1], [0, 0, 1, 1], [], []>} : vector<8x40xf32>, vector<40x512xf32>, vector<8x512xf32> -> vector<8x512xf32>
    %224 = vector.broadcast %201 : vector<8x1xf32> to vector<8x512xf32>
    %225 = arith.addf %223, %224 : vector<8x512xf32>
    %cst_108 = arith.constant 0.000000e+00 : f32
    %226 = vector.broadcast %cst_108 : f32 to vector<8x512xf32>
    %227 = arith.maximumf %225, %226 : vector<8x512xf32>
    %c0_109 = arith.constant 0 : index
    %c0_110 = arith.constant 0 : index
    %228 = vector.load %arg19[%c0_109, %c0_110] : memref<1x40xf32, #tpu.memory_space<vmem>>, vector<1x40xf32>
    %c0_111 = arith.constant 0 : index
    %c0_112 = arith.constant 0 : index
    %229 = vector.load %arg20[%c0_111, %c0_112] : memref<1x1xf32, #tpu.memory_space<vmem>>, vector<1x1xf32>
    %c2_i32_113 = arith.constant 2 : i32
    %230 = tpu.dynamic_rotate %227 by %c2_i32_113 dim 1 : vector<8x512xf32>, i32 -> vector<8x512xf32>
    %cst_114 = arith.constant 0.000000e+00 : f32
    %231 = vector.shape_cast %43 : vector<1x512xi1> to vector<1x512xi1>
    %232 = vector.broadcast %231 : vector<1x512xi1> to vector<8x512xi1>
    %233 = vector.broadcast %cst_114 : f32 to vector<8x512xf32>
    %234 = arith.select %232, %230, %233 : vector<8x512xi1>, vector<8x512xf32>
    %c1_i32_115 = arith.constant 1 : i32
    %235 = tpu.dynamic_rotate %227 by %c1_i32_115 dim 1 : vector<8x512xf32>, i32 -> vector<8x512xf32>
    %cst_116 = arith.constant 0.000000e+00 : f32
    %236 = vector.shape_cast %45 : vector<1x512xi1> to vector<1x512xi1>
    %237 = vector.broadcast %236 : vector<1x512xi1> to vector<8x512xi1>
    %238 = vector.broadcast %cst_116 : f32 to vector<8x512xf32>
    %239 = arith.select %237, %235, %238 : vector<8x512xi1>, vector<8x512xf32>
    %c511_i32_117 = arith.constant 511 : i32
    %240 = tpu.dynamic_rotate %227 by %c511_i32_117 dim 1 : vector<8x512xf32>, i32 -> vector<8x512xf32>
    %cst_118 = arith.constant 0.000000e+00 : f32
    %241 = vector.shape_cast %47 : vector<1x512xi1> to vector<1x512xi1>
    %242 = vector.broadcast %241 : vector<1x512xi1> to vector<8x512xi1>
    %243 = vector.broadcast %cst_118 : f32 to vector<8x512xf32>
    %244 = arith.select %242, %240, %243 : vector<8x512xi1>, vector<8x512xf32>
    %c510_i32_119 = arith.constant 510 : i32
    %245 = tpu.dynamic_rotate %227 by %c510_i32_119 dim 1 : vector<8x512xf32>, i32 -> vector<8x512xf32>
    %cst_120 = arith.constant 0.000000e+00 : f32
    %246 = vector.shape_cast %49 : vector<1x512xi1> to vector<1x512xi1>
    %247 = vector.broadcast %246 : vector<1x512xi1> to vector<8x512xi1>
    %248 = vector.broadcast %cst_120 : f32 to vector<8x512xf32>
    %249 = arith.select %247, %245, %248 : vector<8x512xi1>, vector<8x512xf32>
    %250 = tpu.concatenate %234, %239, %227, %244, %249 in 0 : vector<8x512xf32>, vector<8x512xf32>, vector<8x512xf32>, vector<8x512xf32>, vector<8x512xf32> -> vector<40x512xf32>
    %cst_121 = arith.constant dense<0.000000e+00> : vector<1x512xf32>
    %251 = tpu.matmul %228, %250, %cst_121 {dimension_numbers = #tpu.dot_dimension_numbers<[1], [0], [0], [1], [0, 0, 1, 1], [], []>} : vector<1x40xf32>, vector<40x512xf32>, vector<1x512xf32> -> vector<1x512xf32>
    %252 = vector.broadcast %229 : vector<1x1xf32> to vector<1x512xf32>
    %253 = arith.addf %251, %252 : vector<1x512xf32>
    %254 = math.tanh %253 : vector<1x512xf32>
    %c0_122 = arith.constant 0 : index
    %c0_123 = arith.constant 0 : index
    %255 = vector.load %arg21[%c0_122, %c0_123] : memref<1x512xf32, #tpu.memory_space<vmem>>, vector<1x512xf32>
    tpu.vector_store %arg21[%c0_122, %c0_123], %254 {strides = array<i32>} : memref<1x512xf32, #tpu.memory_space<vmem>>, vector<1x512xf32>,
    return
  }
  func.func @transform_0(%arg0: i32) -> (i32, i32) {
    %c0_i32 = arith.constant 0 : i32
    %c0_i32_0 = arith.constant 0 : i32
    return %c0_i32, %arg0 : i32, i32
  }
  func.func @transform_1(%arg0: i32) -> (i32, i32) {
    %c0_i32 = arith.constant 0 : i32
    %c0_i32_0 = arith.constant 0 : i32
    return %c0_i32, %arg0 : i32, i32
  }
  func.func @transform_2(%arg0: i32) -> (i32, i32) {
    %c0_i32 = arith.constant 0 : i32
    %c0_i32_0 = arith.constant 0 : i32
    %c0_i32_1 = arith.constant 0 : i32
    return %c0_i32, %c0_i32_0 : i32, i32
  }
  func.func @transform_3(%arg0: i32) -> (i32, i32) {
    %c0_i32 = arith.constant 0 : i32
    %c0_i32_0 = arith.constant 0 : i32
    %c0_i32_1 = arith.constant 0 : i32
    return %c0_i32, %c0_i32_0 : i32, i32
  }
  func.func @transform_4(%arg0: i32) -> (i32, i32) {
    %c0_i32 = arith.constant 0 : i32
    %c0_i32_0 = arith.constant 0 : i32
    %c0_i32_1 = arith.constant 0 : i32
    return %c0_i32, %c0_i32_0 : i32, i32
  }
  func.func @transform_5(%arg0: i32) -> (i32, i32) {
    %c0_i32 = arith.constant 0 : i32
    %c0_i32_0 = arith.constant 0 : i32
    %c0_i32_1 = arith.constant 0 : i32
    return %c0_i32, %c0_i32_0 : i32, i32
  }
  func.func @transform_6(%arg0: i32) -> (i32, i32) {
    %c0_i32 = arith.constant 0 : i32
    %c0_i32_0 = arith.constant 0 : i32
    %c0_i32_1 = arith.constant 0 : i32
    return %c0_i32, %c0_i32_0 : i32, i32
  }
  func.func @transform_7(%arg0: i32) -> (i32, i32) {
    %c0_i32 = arith.constant 0 : i32
    %c0_i32_0 = arith.constant 0 : i32
    %c0_i32_1 = arith.constant 0 : i32
    return %c0_i32, %c0_i32_0 : i32, i32
  }
  func.func @transform_8(%arg0: i32) -> (i32, i32, i32) {
    %c0_i32 = arith.constant 0 : i32
    %c0_i32_0 = arith.constant 0 : i32
    %c0_i32_1 = arith.constant 0 : i32
    %c0_i32_2 = arith.constant 0 : i32
    return %c0_i32, %c0_i32_0, %c0_i32_1 : i32, i32, i32
  }
  func.func @transform_9(%arg0: i32) -> (i32, i32) {
    %c0_i32 = arith.constant 0 : i32
    %c0_i32_0 = arith.constant 0 : i32
    %c0_i32_1 = arith.constant 0 : i32
    return %c0_i32, %c0_i32_0 : i32, i32
  }
  func.func @transform_10(%arg0: i32) -> (i32, i32) {
    %c0_i32 = arith.constant 0 : i32
    %c0_i32_0 = arith.constant 0 : i32
    %c0_i32_1 = arith.constant 0 : i32
    return %c0_i32, %c0_i32_0 : i32, i32
  }
  func.func @transform_11(%arg0: i32) -> (i32, i32) {
    %c0_i32 = arith.constant 0 : i32
    %c0_i32_0 = arith.constant 0 : i32
    %c0_i32_1 = arith.constant 0 : i32
    return %c0_i32, %c0_i32_0 : i32, i32
  }
  func.func @transform_12(%arg0: i32) -> (i32, i32, i32) {
    %c0_i32 = arith.constant 0 : i32
    %c0_i32_0 = arith.constant 0 : i32
    %c0_i32_1 = arith.constant 0 : i32
    %c0_i32_2 = arith.constant 0 : i32
    return %c0_i32, %c0_i32_0, %c0_i32_1 : i32, i32, i32
  }
  func.func @transform_13(%arg0: i32) -> (i32, i32) {
    %c0_i32 = arith.constant 0 : i32
    %c0_i32_0 = arith.constant 0 : i32
    %c0_i32_1 = arith.constant 0 : i32
    return %c0_i32, %c0_i32_0 : i32, i32
  }
  func.func @transform_14(%arg0: i32) -> (i32, i32) {
    %c0_i32 = arith.constant 0 : i32
    %c0_i32_0 = arith.constant 0 : i32
    %c0_i32_1 = arith.constant 0 : i32
    return %c0_i32, %c0_i32_0 : i32, i32
  }
  func.func @transform_15(%arg0: i32) -> (i32, i32) {
    %c0_i32 = arith.constant 0 : i32
    %c0_i32_0 = arith.constant 0 : i32
    %c0_i32_1 = arith.constant 0 : i32
    return %c0_i32, %c0_i32_0 : i32, i32
  }
  func.func @transform_16(%arg0: i32) -> (i32, i32) {
    %c0_i32 = arith.constant 0 : i32
    %c0_i32_0 = arith.constant 0 : i32
    %c0_i32_1 = arith.constant 0 : i32
    return %c0_i32, %c0_i32_0 : i32, i32
  }
  func.func @transform_17(%arg0: i32) -> (i32, i32) {
    %c0_i32 = arith.constant 0 : i32
    %c0_i32_0 = arith.constant 0 : i32
    %c0_i32_1 = arith.constant 0 : i32
    return %c0_i32, %c0_i32_0 : i32, i32
  }
  func.func @transform_18(%arg0: i32) -> (i32, i32) {
    %c0_i32 = arith.constant 0 : i32
    %c0_i32_0 = arith.constant 0 : i32
    %c0_i32_1 = arith.constant 0 : i32
    return %c0_i32, %c0_i32_0 : i32, i32
  }
  func.func @transform_19(%arg0: i32) -> (i32, i32) {
    %c0_i32 = arith.constant 0 : i32
    %c0_i32_0 = arith.constant 0 : i32
    %c0_i32_1 = arith.constant 0 : i32
    return %c0_i32, %c0_i32_0 : i32, i32
  }
  func.func @transform_20(%arg0: i32) -> (i32, i32) {
    %c0_i32 = arith.constant 0 : i32
    %c0_i32_0 = arith.constant 0 : i32
    return %c0_i32, %arg0 : i32, i32
  }
}

</mosaic_0001>

<bundles_post_ra>
// kernel: _lambda_.1
= control target key start
LH: loop header
LB: loop body
LE: loop exit
PB: predicated region body
PF: predicated region fallthrough
CT: control target
= control target key end

     0   :  { %s2672_s0 = inlined_call_operand.hbm [shape: f32[1,256], index: 0, kind: input, shape index: {}]   ;;  %s2673_s1 = inlined_call_operand.vmem [shape: f32[2,512], index: 1, kind: input, shape index: {}]   ;;  %s2674_s2 = inlined_call_operand.hbm [shape: f32[8,5], index: 2, kind: input, shape index: {}]   ;;  %s2675_s3 = inlined_call_operand.hbm [shape: f32[8,1], index: 3, kind: input, shape index: {}]   ;;  %s2676_s4 = inlined_call_operand.hbm [shape: f32[8,40], index: 4, kind: input, shape index: {}]   ;;  %s2677_s5 = inlined_call_operand.hbm [shape: f32[8,1], index: 5, kind: input, shape index: {}]   ;;  %s2678_s6 = inlined_call_operand.hbm [shape: f32[8,40], index: 6, kind: input, shape index: {}]   ;;  %s2679_s7 = inlined_call_operand.hbm [shape: f32[8,1], index: 7, kind: input, shape index: {}]   ;;  %s2680_s8 = inlined_call_operand.hbm [shape: f32[3,8,256], index: 8, kind: input, shape index: {}]   ;;  %s2681_s9 = inlined_call_operand.hbm [shape: f32[3,1], index: 9, kind: input, shape index: {}]   ;;  %s2682_s10 = inlined_call_operand.hbm [shape: f32[256,2], index: 10, kind: input, shape index: {}]   ;;  %s2683_s11 = inlined_call_operand.hbm [shape: f32[2,512], index: 11, kind: input, shape index: {}]   ;;  %s2684_s12 = inlined_call_operand.hbm [shape: f32[2,8,512], index: 12, kind: input, shape index: {}]   ;;  %s2685_s13 = inlined_call_operand.vmem [shape: f32[8,512], index: 13, kind: input, shape index: {}]   ;;  %s2686_s14 = inlined_call_operand.hbm [shape: f32[8,40], index: 14, kind: input, shape index: {}]   ;;  %s2687_s15 = inlined_call_operand.hbm [shape: f32[8,1], index: 15, kind: input, shape index: {}]   ;;  %s2688_s16 = inlined_call_operand.vmem [shape: f32[8,40], index: 16, kind: input, shape index: {}]   ;;  %s2689_s17 = inlined_call_operand.vmem [shape: f32[8,1], index: 17, kind: input, shape index: {}]   ;;  %s2690_s18 = inlined_call_operand.vmem [shape: f32[1,40], index: 18, kind: input, shape index: {}]   ;;  %s2691_s19 = inlined_call_operand.<no memory space> [shape: f32[1,1], index: 19, kind: input, shape index: {}]   ;;  %s2692_s20 = inlined_call_operand.hbm [shape: f32[1,512], index: 20, kind: output, shape index: {}]  }
   0x1   :  { %2700 = sst [smem:[#allocation36_spill]] %s2672_s0  ;;  %v25_v0 = vstv %s2691_s19 }
   0x2   :  { %2701 = sst [smem:[#allocation37_spill]] %s2673_s1  ;;  %26 = vst [vmem:[#allocation2] sm:$0x1] %v25_v0 }
   0x3   :  { %2702 = sst [smem:[#allocation38_spill]] %s2674_s2 }
   0x4   :  { %2703 = sst [smem:[#allocation39_spill]] %s2675_s3 }
   0x5   :  { %2704 = sst [smem:[#allocation40_spill]] %s2676_s4 }
   0x6   :  { %27 = vsyncpa [#allocation4], 0 }
   0x7   :  { %28 = vsyncpa [#allocation7], 0 }
   0x8   :  { %29 = vsyncpa [#allocation10], 0 }
   0x9   :  { %30 = vsyncpa [#allocation13], 0 }
   0xa   :  { %31 = vsyncpa [#allocation16], 0 }
   0xb   :  { %32 = vsyncpa [#allocation19], 0 }
   0xc   :  { %33 = vsyncpa [#allocation22], 0 }
   0xd   :  { %34 = vsyncpa [#allocation25], 0  ;;  %s2705_s2 = sld [smem:[#allocation38_spill]] }
  0x13   :  { %s54_s25 = sshll.u32 %s2705_s2, 4  ;;  %s55_s25 = int_to_ptr.hbm [resolvable:$true] %s54_s25 }
  0x14   :  { %35 = vsyncpa [#allocation5], 0  ;;  %s2009_s3 = smov [#allocation6]   ;;  %s2706_s28 = sld [smem:[#allocation40_spill]] }
  0x15   :  { %s56_s26 = sshll.u32 %s2009_s3, 4  ;;  %s2010_s29 = smov [#allocation9]   ;;  %s57_s26 = int_to_ptr.vmem [resolvable:$true] %s56_s26 }
  0x16   :  { %59 = dma.hbm_to_vmem [thread:$0]  %s55_s25, 128, %s57_s26, [#allocation7]  }
  0x17   :  { %s78_s30 = sshll.u32 %s2010_s29, 4  ;;  %s98_s1 = sshll.u32 %s2678_s6, 4  ;;  %s79_s30 = int_to_ptr.vmem [resolvable:$true] %s78_s30  ;;  %s99_s1 = int_to_ptr.hbm [resolvable:$true] %s98_s1 }
  0x18   :  { %s119_s24 = sshll.u32 %s2680_s8, 4  ;;  %s2011_s2 = smov [#allocation12]   ;;  %s120_s24 = int_to_ptr.hbm [resolvable:$true] %s119_s24 }
  0x19   :  { %s100_s3 = sshll.u32 %s2011_s2, 4  ;;  %s2012_s25 = smov [#allocation15]   ;;  %s101_s3 = int_to_ptr.vmem [resolvable:$true] %s100_s3 }
  0x1a   :  { %s76_s4 = sshll.u32 %s2706_s28, 4  ;;  %s121_s26 = sshll.u32 %s2012_s25, 4  ;;  %s77_s4 = int_to_ptr.hbm [resolvable:$true] %s76_s4  ;;  %s122_s26 = int_to_ptr.vmem [resolvable:$true] %s121_s26 }
  0x1b   :  { %81 = dma.hbm_to_vmem [thread:$0]  %s77_s4, 128, %s79_s30, [#allocation10]  }
  0x1c   :  { %103 = dma.hbm_to_vmem [thread:$0]  %s99_s1, 128, %s101_s3, [#allocation13]  }
  0x1d   :  { %s2013_s27 = smov 256   ;;  %s2014_s19 = smov 16  }
  0x1e   :  { %127 = dma.hbm_to_vmem [thread:$0]  %s120_s24, 768, %s122_s26, [#allocation16], %s2013_s27, %s2013_s27, %s2014_s19  }
  0x1f   :  { %s143_s29 = sshll.u32 %s2682_s10, 4  ;;  %s2015_s4 = smov [#allocation18]   ;;  %s144_s29 = int_to_ptr.hbm [resolvable:$true] %s143_s29 }
  0x20   :  { %s145_s30 = sshll.u32 %s2015_s4, 4  ;;  %s167_s21 = sshll.u32 %s2684_s12, 4  ;;  %s146_s30 = int_to_ptr.vmem [resolvable:$true] %s145_s30  ;;  %s168_s21 = int_to_ptr.hbm [resolvable:$true] %s167_s21 }
  0x21   :  { %s2016_s22 = smov 128   ;;  %s2017_s1 = smov 8  }
  0x22   :  { %151 = dma.hbm_to_vmem [thread:$0]  %s144_s29, 4096, %s146_s30, [#allocation19], %s2016_s22, %s2016_s22, %s2017_s1  }
  0x23   :  { %s2018_s23 = smov [#allocation21]   ;;  %s2019_s24 = smov 512  }
  0x24   :  { %s169_s2 = sshll.u32 %s2018_s23, 4  ;;  %s2020_s3 = smov 32   ;;  %s170_s2 = int_to_ptr.vmem [resolvable:$true] %s169_s2 }
  0x25   :  { %175 = dma.hbm_to_vmem [thread:$0]  %s168_s21, 1024, %s170_s2, [#allocation22], %s2019_s24, %s2019_s24, %s2020_s3  }
  0x26   :  { %s2707_s26 = sld [smem:[#allocation36_spill]]  ;;  %s2021_s19 = smov [#allocation3]  }
  0x27   :  { %s43_s28 = sshll.u32 %s2021_s19, 4  ;;  %s2708_s4 = sld [smem:[#allocation39_spill]]  ;;  %s44_s28 = int_to_ptr.vmem [resolvable:$true] %s43_s28 }
  0x28   :  { %s2022_s29 = smov [#allocation8]   ;;  %s87_s21 = sshll.u32 %s2677_s5, 4  ;;  %s88_s21 = int_to_ptr.hbm [resolvable:$true] %s87_s21 }
  0x29   :  { %s67_s30 = sshll.u32 %s2022_s29, 4  ;;  %s109_s2 = sshll.u32 %s2679_s7, 4  ;;  %s68_s30 = int_to_ptr.vmem [resolvable:$true] %s67_s30  ;;  %s110_s2 = int_to_ptr.hbm [resolvable:$true] %s109_s2 }
  0x2a   :  { %s2023_s24 = smov [#allocation11]   ;;  %s2024_s25 = smov [#allocation14]  }
  0x2b   :  { %s89_s3 = sshll.u32 %s2023_s24, 4  ;;  %s111_s10 = sshll.u32 %s2024_s25, 4  ;;  %s90_s3 = int_to_ptr.vmem [resolvable:$true] %s89_s3  ;;  %s112_s10 = int_to_ptr.vmem [resolvable:$true] %s111_s10 }
  0x2c   :  { %s41_s27 = sshll.u32 %s2707_s26, 4  ;;  %s133_s19 = sshll.u32 %s2681_s9, 4  ;;  %s42_s27 = int_to_ptr.hbm [resolvable:$true] %s41_s27  ;;  %s134_s19 = int_to_ptr.hbm [resolvable:$true] %s133_s19 }
  0x2d   :  { %s65_s8 = sshll.u32 %s2708_s4, 4  ;;  %s157_s6 = sshll.u32 %s2683_s11, 4  ;;  %s66_s8 = int_to_ptr.hbm [resolvable:$true] %s65_s8  ;;  %s158_s6 = int_to_ptr.hbm [resolvable:$true] %s157_s6 }
  0x2e   :  { %46 = dma.hbm_to_vmem [thread:$0]  %s42_s27, 32, %s44_s28, [#allocation4]  }
  0x2f   :  { %70 = dma.hbm_to_vmem [thread:$0]  %s66_s8, 128, %s68_s30, [#allocation7]  }
  0x30   :  { %92 = dma.hbm_to_vmem [thread:$0]  %s88_s21, 128, %s90_s3, [#allocation10]  }
  0x31   :  { %114 = dma.hbm_to_vmem [thread:$0]  %s110_s2, 128, %s112_s10, [#allocation13]  }
  0x32   :  { %s2025_s12 = smov [#allocation17]   ;;  %s2026_s4 = smov [#allocation20]  }
  0x33   :  { %s135_s7 = sshll.u32 %s2025_s12, 4  ;;  %s159_s8 = sshll.u32 %s2026_s4, 4  ;;  %s136_s7 = int_to_ptr.vmem [resolvable:$true] %s135_s7  ;;  %s160_s8 = int_to_ptr.vmem [resolvable:$true] %s159_s8 }
  0x34   :  { %138 = dma.hbm_to_vmem [thread:$0]  %s134_s19, 64, %s136_s7, [#allocation16]  }
  0x35   :  { %s183_s0 = sshll.u32 %s2686_s14, 4  ;;  %s194_s21 = sshll.u32 %s2687_s15, 4  ;;  %s184_s0 = int_to_ptr.hbm [resolvable:$true] %s183_s0  ;;  %s195_s21 = int_to_ptr.hbm [resolvable:$true] %s194_s21 }
  0x36   :  { %162 = dma.hbm_to_vmem [thread:$0]  %s158_s6, 128, %s160_s8, [#allocation19]  }
  0x37   :  { %s2027_s1 = smov [#allocation23]   ;;  %s2028_s23 = smov [#allocation24]  }
  0x38   :  { %s185_s11 = sshll.u32 %s2027_s1, 4  ;;  %s196_s2 = sshll.u32 %s2028_s23, 4  ;;  %s186_s11 = int_to_ptr.vmem [resolvable:$true] %s185_s11  ;;  %s197_s2 = int_to_ptr.vmem [resolvable:$true] %s196_s2 }
  0x39   :  { %188 = dma.hbm_to_vmem [thread:$0]  %s184_s0, 128, %s186_s11, [#allocation22]  }
  0x3a   :  { %199 = dma.hbm_to_vmem [thread:$0]  %s195_s21, 128, %s197_s2, [#allocation25]  }
  0x3b   :  { %1991 = dma.done.wait [#allocation4], 32  }
  0x3c   :  { %1992 = vsyncadd [#allocation4], 4294967264 }
  0x3d   :  { %1993 = dma.done.wait [#allocation7], 256  }
  0x3e   :  { %1994 = vsyncadd [#allocation7], 4294967040 }
  0x3f   :  { %1995 = dma.done.wait [#allocation10], 256  }
  0x40   :  { %1996 = vsyncadd [#allocation10], 4294967040 }
  0x41   :  { %1997 = dma.done.wait [#allocation13], 256  }
  0x42   :  { %1998 = vsyncadd [#allocation13], 4294967040 }
  0x43   :  { %1999 = dma.done.wait [#allocation16], 832  }
  0x44   :  { %2000 = vsyncadd [#allocation16], 4294966464 }
  0x45   :  { %2001 = dma.done.wait [#allocation19], 4224  }
  0x46   :  { %2002 = vsyncadd [#allocation19], 4294963072 }
  0x47   :  { %2003 = dma.done.wait [#allocation22], 1152  }
  0x48   :  { %2004 = vsyncadd [#allocation22], 4294966144 }
  0x49   :  { %2005 = dma.done.wait [#allocation25], 128  }
  0x4a   :  { %2006 = vsyncadd [#allocation25], 4294967168  ;;  %v333_v1 = vld [vmem:[#allocation3] sm:$0x3]  ;;  %s2029_s14 = smov 2   ;;  %s2030_s15 = smov 1   ;;  %v264_v4 = vlaneseq }
  0x4b   :  { %v2185_v2 = vperm.slane %v333_v1, 0  ;;  %s2031_s24 = smov 127   ;;  %v338_v3 = vperm.slane %v333_v1, 1  ;;  %s2032_s3 = smov 126   ;;  %v335_v5 = vld [vmem:[#allocation8] sm:$0xff]  ;;  %v2033_v6 = vmov 0  }
  0x4c   :  { %1612 = vset.pattern.permute.xlu2 %v2033_v6  ;;  %1613 = vset.pattern.permute.xlu0 %v2033_v6  ;;  %v2200_v7 = vand.u32 127, %v264_v4  ;;  %vm2694_vm7 = vcmask 1040384   ;;  %vm2693_vm10 = vcmask 1041408   ;;  %vm401_vm12 = vcmask 1042432   ;;  %v334_v46 = vld [vmem:[#allocation6] sm:$0xff]  ;;  %v466_v56 = vld [vmem:[#allocation11] sm:$0xff] }
  0x4d   :  { %341 = vrot.lane.b32.xlu1 %v2185_v2, %s2029_s14  ;;  %350 = vrot.lane.b32.xlu0 %v2185_v2, %s2030_s15  ;;  %vm404_vm13 = vcmask 1043456   ;;  %vm416_vm14 = vcmask 1044480   ;;  %vm412_vm15 = vcmask 39936   ;;  %s2709_s26 = sld [smem:[#allocation37_spill]]  ;;  %s1477_s21 = sshll.u32 %s2692_s20, 4  ;;  %s1478_s21 = int_to_ptr.hbm [resolvable:$true] %s1477_s21 }
  0x4e   :  { %359 = vrot.lane.b32.xlu2 %v2185_v2, %s2031_s24  ;;  %1614 = vset.pattern.permute.xlu1 %v2033_v6  ;;  %v266_v9 = vadd.s32 128, %v2200_v7  ;;  %vm354_vm0 = vcmp.lt.s32.totalorder %v2200_v7, 1  ;;  %vm345_vm1 = vcmp.lt.s32.totalorder %v2200_v7, 2  ;;  %vm2699_vm2 = vcmp.ge.s32.totalorder %v2200_v7, 1 }
  0x4f   :  { %vm295_vm4 = vcmp.lt.s32.totalorder %v2200_v7, 127  ;;  %vm291_vm5 = vcmp.ge.s32.totalorder %v2200_v7, 2  ;;  %vm297_vm9 = vcmp.lt.s32.totalorder %v2200_v7, 126 }
  0x50   :  { %v2203_v12 = vand.u32 127, %v266_v9  ;;  %v465_v9 = vld [vmem:[#allocation9] sm:$0xff] }
  0x52   :  { %vm2697_vm3 = vcmp.ge.s32.totalorder %v2203_v12, 1  ;;  %vm2695_vm6 = vcmp.ge.s32.totalorder %v2203_v12, 2  ;;  %vm2698_vm8 = vcmp.lt.s32.totalorder %v2203_v12, 127  ;;  %vm298_vm11 = vcmp.lt.s32.totalorder %v2203_v12, 126 }
  0x55   :  { %343 = vrot.lane.b32.xlu1 %v338_v3, %s2029_s14  ;;  %352 = vrot.lane.b32.xlu0 %v338_v3, %s2030_s15 }
  0x56   :  { %361 = vrot.lane.b32.xlu2 %v338_v3, %s2031_s24 }
  0x5d   :  { %370 = vrot.lane.b32.xlu1 %v338_v3, %s2032_s3  ;;  %368 = vrot.lane.b32.xlu0 %v2185_v2, %s2032_s3 }
  0x5e   :  { %409 = vperm.xlu2 %1612, %v335_v5  }
  0xa8   :  { %v360_v8 = vpop.permute.xlu2 %359 }
  0xb0   :  { %v362_v15 = vpop.permute.xlu2 %361 }
  0xb1   :  { %v364_v24 = vsel %vm295_vm4, %v360_v8, %v362_v15  ;;  %v365_v25 = vsel %vm295_vm4, %v362_v15, %v360_v8 }
  0xb2   :  { %v366_v30 = vsel %vm295_vm4, %v364_v24, 0.0  ;;  %v367_v31 = vsel %vm2698_vm8, %v365_v25, 0.0  ;;  %v734_v24 = vld [vmem:[#allocation18 + $0xf0] sm:$0xff]  ;;  %v717_v25 = vld [vmem:[#allocation18 + $0x68] sm:$0xff] }
  0xb3   :  { %v385_v38 = vrot.slane %v366_v30, 5  ;;  %v386_v39 = vrot.slane %v367_v31, 5  ;;  %v731_v30 = vld [vmem:[#allocation18 + $0xd8] sm:$0xff] }
  0xb8   :  { %v410_v49 = vpop.permute.xlu2 %409 }
  0xbf   :  { %v342_v10 = vpop.permute.xlu1 %341  ;;  %v351_v11 = vpop.permute.xlu0 %350 }
  0xc7   :  { %v344_v13 = vpop.permute.xlu1 %343  ;;  %v353_v14 = vpop.permute.xlu0 %352 }
  0xc8   :  { %v355_v16 = vsel %vm354_vm0, %v351_v11, %v353_v14  ;;  %v356_v17 = vsel %vm354_vm0, %v353_v14, %v351_v11  ;;  %v346_v18 = vsel %vm345_vm1, %v342_v10, %v344_v13  ;;  %v347_v19 = vsel %vm345_vm1, %v344_v13, %v342_v10 }
  0xc9   :  { %v357_v20 = vsel %vm2699_vm2, %v356_v17, 0.0  ;;  %v358_v21 = vsel %vm2697_vm3, %v355_v16, 0.0  ;;  %v348_v26 = vsel %vm291_vm5, %v347_v19, 0.0  ;;  %v349_v27 = vsel %vm2695_vm6, %v346_v18, 0.0 }
  0xca   :  { %v379_v22 = vrot.slane %v357_v20, 7  ;;  %v380_v23 = vrot.slane %v358_v21, 7  ;;  %v567_v20 = vld [vmem:[#allocation14] sm:$0xff]  ;;  %v719_v21 = vld [vmem:[#allocation18 + $0x78] sm:$0xff] }
  0xcc   :  { %v396_v28 = vsel %vm2694_vm7, %v348_v26, %v379_v22  ;;  %v397_v29 = vsel %vm2694_vm7, %v349_v27, %v380_v23  ;;  %v735_v22 = vld [vmem:[#allocation18 + $0xf8] sm:$0xff]  ;;  %v718_v23 = vld [vmem:[#allocation18 + $0x70] sm:$0xff]  ;;  %v733_v26 = vld [vmem:[#allocation18 + $0xe8] sm:$0xff] }
  0xcd   :  { %v399_v36 = vsel %vm2693_vm10, %v396_v28, %v2185_v2  ;;  %v400_v37 = vsel %vm2693_vm10, %v397_v29, %v338_v3  ;;  %v716_v27 = vld [vmem:[#allocation18 + $0x60] sm:$0xff]  ;;  %v715_v29 = vld [vmem:[#allocation18 + $0x58] sm:$0xff] }
  0xce   :  { %v402_v44 = vsel %vm401_vm12, %v399_v36, %v385_v38  ;;  %v403_v45 = vsel %vm401_vm12, %v400_v37, %v386_v39  ;;  %vm520_vm12 = vcmask 326656   ;;  %v732_v28 = vld [vmem:[#allocation18 + $0xe0] sm:$0xff] }
  0xcf   :  { %v371_v32 = vpop.permute.xlu1 %370  ;;  %v369_v33 = vpop.permute.xlu0 %368 }
  0xd0   :  { %v373_v34 = vsel %vm297_vm9, %v369_v33, %v371_v32  ;;  %v374_v35 = vsel %vm297_vm9, %v371_v32, %v369_v33 }
  0xd1   :  { %v375_v40 = vsel %vm297_vm9, %v373_v34, 0.0  ;;  %v376_v41 = vsel %vm298_vm11, %v374_v35, 0.0 }
  0xd2   :  { %v391_v42 = vrot.slane %v375_v40, 4  ;;  %v392_v43 = vrot.slane %v376_v41, 4 }
  0xd4   :  { %v405_v47 = vsel %vm404_vm13, %v402_v44, %v391_v42  ;;  %v406_v48 = vsel %vm404_vm13, %v403_v45, %v392_v43  ;;  %v566_v45 = vld [vmem:[#allocation12] sm:$0xff] }
  0xd5   :  { %1494 = vmatpush.msk.msra.mxu2 %vm416_vm14, %v405_v47  ;;  %1496 = vmatpush.msk.msra.mxu3 %vm416_vm14, %v406_v48  ;;  %v714_v48 = vld [vmem:[#allocation18 + $0x50] sm:$0xff]  ;;  %vm789_vm14 = vcmask 15360  }
  0xd6   :  { %1495 = vmatmul.msk.f32.vlgmr.msra.gmra.mxu2 %vm412_vm15, %v334_v46  ;;  %1497 = vmatmul.msk.f32.vlgmr.msra.gmra.mxu3 %vm412_vm15, %v334_v46  ;;  %vm902_vm15 = vcmask 1045508  }
 0x159   :  { %v440_v50 = vpop.f32.mrf.mxu2  ;;  %v460_v51 = vpop.f32.mrf.mxu3 }
 0x15a   :  { %v441_v52 = vadd.f32 %v440_v50, %v410_v49  ;;  %v461_v53 = vadd.f32 %v460_v51, %v410_v49  ;;  %v730_v49 = vld [vmem:[#allocation18 + $0xd0] sm:$0xff]  ;;  %v713_v50 = vld [vmem:[#allocation18 + $0x48] sm:$0xff] }
 0x15b   :  { %v729_v51 = vld [vmem:[#allocation18 + $0xc8] sm:$0xff] }
 0x15c   :  { %v463_v54 = vmax.f32 %v441_v52, 0.0  ;;  %v464_v55 = vmax.f32 %v461_v53, 0.0  ;;  %v712_v52 = vld [vmem:[#allocation18 + $0x40] sm:$0xff] }
 0x15d   :  { %v728_v53 = vld [vmem:[#allocation18 + $0xc0] sm:$0xff] }
 0x15e   :  { %505 = vrot.lane.b32.xlu1 %v464_v55, %s2032_s3  ;;  %491 = vrot.lane.b32.xlu2 %v463_v54, %s2031_s24 }
 0x15f   :  { %503 = vrot.lane.b32.xlu0 %v463_v54, %s2032_s3 }
 0x166   :  { %479 = vrot.lane.b32.xlu1 %v463_v54, %s2030_s15  ;;  %481 = vrot.lane.b32.xlu2 %v464_v55, %s2030_s15 }
 0x167   :  { %493 = vrot.lane.b32.xlu0 %v464_v55, %s2031_s24 }
 0x16e   :  { %469 = vrot.lane.b32.xlu1 %v464_v55, %s2029_s14  ;;  %517 = vperm.xlu2 %1612, %v466_v56   ;;  %v710_v56 = vld [vmem:[#allocation18 + $0x30] sm:$0xff] }
 0x16f   :  { %467 = vrot.lane.b32.xlu0 %v463_v54, %s2029_s14 }
 0x1b8   :  { %v492_v61 = vpop.permute.xlu2 %491 }
 0x1c0   :  { %v482_v2 = vpop.permute.xlu2 %481 }
 0x1c8   :  { %v518_v13 = vpop.permute.xlu2 %517 }
 0x1d0   :  { %v506_v57 = vpop.permute.xlu1 %505 }
 0x1d1   :  { %v504_v58 = vpop.permute.xlu0 %503 }
 0x1d2   :  { %v507_v59 = vsel %vm297_vm9, %v504_v58, %v506_v57  ;;  %v508_v60 = vsel %vm297_vm9, %v506_v57, %v504_v58  ;;  %v726_v57 = vld [vmem:[#allocation18 + $0xb0] sm:$0xff]  ;;  %v709_v58 = vld [vmem:[#allocation18 + $0x28] sm:$0xff] }
 0x1d3   :  { %1498 = vmatpush.msk.msrb.mxu2 %vm297_vm9, %v507_v59  ;;  %1503 = vmatpush.msk.msrb.mxu3 %vm298_vm11, %v508_v60  ;;  %v725_v59 = vld [vmem:[#allocation18 + $0xa8] sm:$0xff]  ;;  %v708_v60 = vld [vmem:[#allocation18 + $0x20] sm:$0xff] }
 0x1d8   :  { %v480_v62 = vpop.permute.xlu1 %479 }
 0x1d9   :  { %v494_v63 = vpop.permute.xlu0 %493  ;;  %v484_v3 = vsel %vm354_vm0, %v482_v2, %v480_v62  ;;  %v483_v5 = vsel %vm354_vm0, %v480_v62, %v482_v2  ;;  %v707_v62 = vld [vmem:[#allocation18 + $0x18] sm:$0xff]  ;;  %v705_v2 = vld [vmem:[#allocation18 + $0x8] sm:$0xff] }
 0x1da   :  { %v495_v0 = vsel %vm295_vm4, %v492_v61, %v494_v63  ;;  %v496_v1 = vsel %vm295_vm4, %v494_v63, %v492_v61  ;;  %v724_v61 = vld [vmem:[#allocation18 + $0xa0] sm:$0xff]  ;;  %v723_v63 = vld [vmem:[#allocation18 + $0x98] sm:$0xff] }
 0x1db   :  { %1499 = vmatpush.msk.msrb.mxu2 %vm295_vm4, %v495_v0  ;;  %1504 = vmatpush.msk.msrb.mxu3 %vm2698_vm8, %v496_v1  ;;  %v706_v0 = vld [vmem:[#allocation18 + $0x10] sm:$0xff] }
 0x1dc   :  { %v722_v1 = vld [vmem:[#allocation18 + $0x90] sm:$0xff] }
 0x1dd   :  { %537 = vmatpush.msrb.mxu2 %v463_v54  ;;  %557 = vmatpush.msrb.mxu3 %v464_v55  ;;  %v711_v54 = vld [vmem:[#allocation18 + $0x38] sm:$0xff] }
 0x1de   :  { %v727_v55 = vld [vmem:[#allocation18 + $0xb8] sm:$0xff] }
 0x1df   :  { %1500 = vmatpush.msk.msrb.mxu2 %vm2699_vm2, %v484_v3  ;;  %1505 = vmatpush.msk.msrb.mxu3 %vm2697_vm3, %v483_v5  ;;  %v721_v3 = vld [vmem:[#allocation18 + $0x88] sm:$0xff]  ;;  %v704_v5 = vld [vmem:[#allocation18] sm:$0xff] }
 0x1e0   :  { %v470_v6 = vpop.permute.xlu1 %469 }
 0x1e1   :  { %v468_v8 = vpop.permute.xlu0 %467 }
 0x1e2   :  { %v472_v10 = vsel %vm345_vm1, %v470_v6, %v468_v8  ;;  %v471_v11 = vsel %vm345_vm1, %v468_v8, %v470_v6  ;;  %v720_v6 = vld [vmem:[#allocation18 + $0x80] sm:$0xff]  ;;  %v736_v8 = vld [vmem:[#allocation17] sm:$0x7] }
 0x1e3   :  { %1501 = vmatpush.msk.msrb.mxu2 %vm291_vm5, %v472_v10  ;;  %1506 = vmatpush.msk.msrb.mxu3 %vm2695_vm6, %v471_v11 }
 0x1e4   :  { %1502 = vmatmul.msk.f32.vlgmr.msrb.gmra.mxu2 %vm520_vm12, %v465_v9  ;;  %1507 = vmatmul.msk.f32.vlgmr.msrb.gmra.mxu3 %vm520_vm12, %v465_v9  ;;  %v782_v9 = vld [vmem:[#allocation20] sm:$0xff] }
 0x1e5   :  { %742 = vmatpush.msra.mxu2 %v719_v21  ;;  %762 = vmatpush.msra.mxu3 %v735_v22  ;;  %784 = vst [vmem:[#allocation1] ss:$4 sm:$0xff] %v782_v9  ;;  %v651_v21 = vld [vmem:[#allocation15 + $0x8] sm:$0xff] }
 0x1e7   :  { %743 = vmatpush.msra.mxu2 %v718_v23  ;;  %763 = vmatpush.msra.mxu3 %v734_v24  ;;  %v668_v24 = vld [vmem:[#allocation15 + $0x18] sm:$0xff] }
 0x1e9   :  { %744 = vmatpush.msra.mxu2 %v717_v25  ;;  %764 = vmatpush.msra.mxu3 %v733_v26  ;;  %v685_v25 = vld [vmem:[#allocation15 + $0x28] sm:$0xff] }
 0x1eb   :  { %745 = vmatpush.msra.mxu2 %v716_v27  ;;  %765 = vmatpush.msra.mxu3 %v732_v28 }
 0x1ec   :  { %v785_v10 = vld.sshfl [vmem:[#allocation1] sm:$0xff pattern:$0x73625140]  ;;  %v786_v11 = vld.sshfl [vmem:[#allocation1 + $0x8] sm:$0xff pattern:$0x73625140] }
 0x1ed   :  { %746 = vmatpush.msra.mxu2 %v715_v29  ;;  %766 = vmatpush.msra.mxu3 %v731_v30 }
 0x1ef   :  { %747 = vmatpush.msra.mxu2 %v714_v48  ;;  %767 = vmatpush.msra.mxu3 %v730_v49 }
 0x1f1   :  { %748 = vmatpush.msra.mxu2 %v713_v50  ;;  %768 = vmatpush.msra.mxu3 %v729_v51 }
 0x1f3   :  { %749 = vmatpush.msra.mxu2 %v712_v52  ;;  %769 = vmatpush.msra.mxu3 %v728_v53 }
 0x1f5   :  { %750 = vmatpush.msra.mxu2 %v711_v54  ;;  %770 = vmatpush.msra.mxu3 %v727_v55 }
 0x1f7   :  { %751 = vmatpush.msra.mxu2 %v710_v56  ;;  %771 = vmatpush.msra.mxu3 %v726_v57 }
 0x1f9   :  { %752 = vmatpush.msra.mxu2 %v709_v58  ;;  %772 = vmatpush.msra.mxu3 %v725_v59 }
 0x1fb   :  { %753 = vmatpush.msra.mxu2 %v708_v60  ;;  %773 = vmatpush.msra.mxu3 %v724_v61 }
 0x1fd   :  { %754 = vmatpush.msra.mxu2 %v707_v62  ;;  %774 = vmatpush.msra.mxu3 %v723_v63 }
 0x1ff   :  { %755 = vmatpush.msra.mxu2 %v706_v0  ;;  %775 = vmatpush.msra.mxu3 %v722_v1 }
 0x201   :  { %756 = vmatpush.msra.mxu2 %v705_v2  ;;  %776 = vmatpush.msra.mxu3 %v721_v3 }
 0x203   :  { %757 = vmatpush.msra.mxu2 %v704_v5  ;;  %777 = vmatpush.msra.mxu3 %v720_v6 }
 0x267   :  { %v541_v14 = vpop.f32.mrf.mxu2  ;;  %v561_v15 = vpop.f32.mrf.mxu3 }
 0x268   :  { %v542_v16 = vadd.f32 %v541_v14, %v518_v13  ;;  %v562_v17 = vadd.f32 %v561_v15, %v518_v13 }
 0x26a   :  { %v564_v18 = vmax.f32 %v542_v16, 0.0  ;;  %v565_v19 = vmax.f32 %v562_v17, 0.0  ;;  %v650_v17 = vld [vmem:[#allocation15] sm:$0xff] }
 0x26c   :  { %584 = vrot.lane.b32.xlu2 %v564_v18, %s2031_s24  ;;  %592 = vrot.lane.b32.xlu0 %v564_v18, %s2032_s3 }
 0x26d   :  { %594 = vrot.lane.b32.xlu1 %v565_v19, %s2032_s3 }
 0x274   :  { %578 = vrot.lane.b32.xlu2 %v565_v19, %s2030_s15  ;;  %586 = vrot.lane.b32.xlu0 %v565_v19, %s2031_s24 }
 0x275   :  { %576 = vrot.lane.b32.xlu1 %v564_v18, %s2030_s15 }
 0x27c   :  { %602 = vperm.xlu2 %1612, %v567_v20   ;;  %568 = vrot.lane.b32.xlu0 %v564_v18, %s2029_s14  ;;  %v684_v20 = vld [vmem:[#allocation15 + $0x20] sm:$0xff] }
 0x27d   :  { %570 = vrot.lane.b32.xlu1 %v565_v19, %s2029_s14 }
 0x284   :  { %739 = vperm.xlu0 %1613, %v736_v8  }
 0x2c6   :  { %v585_v33 = vpop.permute.xlu2 %584 }
 0x2ce   :  { %v579_v40 = vpop.permute.xlu2 %578 }
 0x2d6   :  { %v603_v13 = vpop.permute.xlu2 %602 }
 0x2de   :  { %v593_v31 = vpop.permute.xlu0 %592 }
 0x2df   :  { %v595_v32 = vpop.permute.xlu1 %594 }
 0x2e0   :  { %v596_v34 = vsel %vm297_vm9, %v593_v31, %v595_v32  ;;  %v597_v35 = vsel %vm297_vm9, %v595_v32, %v593_v31 }
 0x2e1   :  { %1508 = vmatpush.msk.msra.mxu0 %vm297_vm9, %v596_v34  ;;  %1513 = vmatpush.msk.msra.mxu1 %vm298_vm11, %v597_v35 }
 0x2e6   :  { %v587_v36 = vpop.permute.xlu0 %586 }
 0x2e7   :  { %v577_v37 = vpop.permute.xlu1 %576  ;;  %v588_v38 = vsel %vm295_vm4, %v585_v33, %v587_v36  ;;  %v589_v39 = vsel %vm295_vm4, %v587_v36, %v585_v33 }
 0x2e8   :  { %1509 = vmatpush.msk.msra.mxu0 %vm295_vm4, %v588_v38  ;;  %1514 = vmatpush.msk.msra.mxu1 %vm2698_vm8, %v589_v39  ;;  %v581_v41 = vsel %vm354_vm0, %v579_v40, %v577_v37  ;;  %v580_v42 = vsel %vm354_vm0, %v577_v37, %v579_v40 }
 0x2ea   :  { %621 = vmatpush.msra.mxu0 %v564_v18  ;;  %641 = vmatpush.msra.mxu1 %v565_v19  ;;  %v667_v19 = vld [vmem:[#allocation15 + $0x10] sm:$0xff] }
 0x2ec   :  { %1510 = vmatpush.msk.msra.mxu0 %vm2699_vm2, %v581_v41  ;;  %1515 = vmatpush.msk.msra.mxu1 %vm2697_vm3, %v580_v42 }
 0x2ee   :  { %v569_v43 = vpop.permute.xlu0 %568 }
 0x2ef   :  { %v571_v44 = vpop.permute.xlu1 %570 }
 0x2f0   :  { %v573_v46 = vsel %vm345_vm1, %v571_v44, %v569_v43  ;;  %v572_v47 = vsel %vm345_vm1, %v569_v43, %v571_v44 }
 0x2f1   :  { %1511 = vmatpush.msk.msra.mxu0 %vm291_vm5, %v573_v46  ;;  %1516 = vmatpush.msk.msra.mxu1 %vm2695_vm6, %v572_v47 }
 0x2f2   :  { %1512 = vmatmul.msk.f32.vlgmr.msra.gmra.mxu0 %vm520_vm12, %v566_v45  ;;  %1517 = vmatmul.msk.f32.vlgmr.msra.gmra.mxu1 %vm520_vm12, %v566_v45 }
 0x2f3   :  { %1518 = vmatpush.msk.msrb.mxu0 %vm2693_vm10, %v785_v10  ;;  %1520 = vmatpush.msk.msrb.mxu1 %vm2693_vm10, %v786_v11  ;;  %v787_v10 = vld.sshfl [vmem:[#allocation1 + $0x10] sm:$0xff pattern:$0x73625140]  ;;  %v788_v11 = vld.sshfl [vmem:[#allocation1 + $0x18] sm:$0xff pattern:$0x73625140] }
 0x2f5   :  { %1522 = vmatpush.msk.msra.mxu0 %vm2693_vm10, %v787_v10  ;;  %1524 = vmatpush.msk.msra.mxu1 %vm2693_vm10, %v788_v11  ;;  %v927_v10 = vld [vmem:[#allocation21 + $0x10] sm:$0xff]  ;;  %v928_v11 = vld [vmem:[#allocation21 + $0x18] sm:$0xff] }
 0x36f   :  { %v625_v14 = vpop.f32.mrf.mxu0  ;;  %v645_v15 = vpop.f32.mrf.mxu1 }
 0x370   :  { %v626_v16 = vadd.f32 %v625_v14, %v603_v13  ;;  %v646_v18 = vadd.f32 %v645_v15, %v603_v13  ;;  %v740_v13 = vpop.permute.xlu0 %739 }
 0x372   :  { %v648_v22 = vmax.f32 %v626_v16, 0.0  ;;  %v649_v23 = vmax.f32 %v646_v18, 0.0 }
 0x374   :  { %v652_v26 = vmul.f32 %v650_v17, %v648_v22  ;;  %v669_v27 = vmul.f32 %v667_v19, %v648_v22  ;;  %v686_v28 = vmul.f32 %v684_v20, %v648_v22  ;;  %v653_v29 = vmul.f32 %v651_v21, %v649_v23 }
 0x375   :  { %v670_v30 = vmul.f32 %v668_v24, %v649_v23  ;;  %v687_v31 = vmul.f32 %v685_v25, %v649_v23 }
 0x376   :  { %v654_v32 = vrot.slane %v652_v26, 4  ;;  %v671_v33 = vrot.slane %v669_v27, 4  ;;  %v688_v34 = vrot.slane %v686_v28, 4  ;;  %v660_v35 = vrot.slane %v653_v29, 4 }
 0x377   :  { %v677_v36 = vrot.slane %v670_v30, 4  ;;  %v694_v37 = vrot.slane %v687_v31, 4 }
 0x378   :  { %v655_v38 = vadd.f32 %v654_v32, %v652_v26  ;;  %v672_v39 = vadd.f32 %v671_v33, %v669_v27  ;;  %v689_v40 = vadd.f32 %v688_v34, %v686_v28  ;;  %v661_v41 = vadd.f32 %v660_v35, %v653_v29 }
 0x379   :  { %v678_v42 = vadd.f32 %v677_v36, %v670_v30  ;;  %v695_v43 = vadd.f32 %v694_v37, %v687_v31  ;;  %v889_v37 = vld [vmem:[%s2709_s26] sm:$0xff] }
 0x37a   :  { %v656_v44 = vrot.slane %v655_v38, 2  ;;  %v673_v45 = vrot.slane %v672_v39, 2  ;;  %v690_v46 = vrot.slane %v689_v40, 2  ;;  %v662_v47 = vrot.slane %v661_v41, 2 }
 0x37b   :  { %v679_v48 = vrot.slane %v678_v42, 2  ;;  %v696_v49 = vrot.slane %v695_v43, 2 }
 0x37c   :  { %v657_v50 = vadd.f32 %v656_v44, %v655_v38  ;;  %v674_v51 = vadd.f32 %v673_v45, %v672_v39  ;;  %v691_v52 = vadd.f32 %v690_v46, %v689_v40  ;;  %v663_v53 = vadd.f32 %v662_v47, %v661_v41  ;;  %v926_v45 = vld [vmem:[#allocation21 + $0x8] sm:$0xff] }
 0x37d   :  { %v680_v54 = vadd.f32 %v679_v48, %v678_v42  ;;  %v697_v55 = vadd.f32 %v696_v49, %v695_v43  ;;  %v943_v48 = vld [vmem:[#allocation21 + $0x28] sm:$0xff] }
 0x37e   :  { %v658_v56 = vrot.slane %v657_v50, 1  ;;  %v675_v57 = vrot.slane %v674_v51, 1  ;;  %v664_v58 = vrot.slane %v663_v53, 1  ;;  %v692_v59 = vrot.slane %v691_v52, 1 }
 0x37f   :  { %v681_v60 = vrot.slane %v680_v54, 1  ;;  %v698_v61 = vrot.slane %v697_v55, 1 }
 0x380   :  { %v659_v62 = vadd.f32 %v658_v56, %v657_v50  ;;  %v676_v63 = vadd.f32 %v675_v57, %v674_v51  ;;  %v693_v0 = vadd.f32 %v692_v59, %v691_v52  ;;  %v665_v1 = vadd.f32 %v664_v58, %v663_v53  ;;  %v925_v50 = vld [vmem:[#allocation21] sm:$0xff]  ;;  %v922_v51 = vld [vmem:[%s2685_s13 + $0x8] sm:$0xff]  ;;  %v921_v57 = vld [vmem:[%s2685_s13] sm:$0xff] }
 0x381   :  { %v682_v2 = vadd.f32 %v681_v60, %v680_v54  ;;  %v699_v3 = vadd.f32 %v698_v61, %v697_v55  ;;  %v942_v58 = vld [vmem:[#allocation21 + $0x20] sm:$0xff] }
 0x382   :  { %v700_v5 = vsel %vm2694_vm7, %v659_v62, %v676_v63 }
 0x383   :  { %v702_v6 = vsel %vm2693_vm10, %v700_v5, %v693_v0  ;;  %v701_v8 = vsel %vm2694_vm7, %v665_v1, %v682_v2 }
 0x384   :  { %758 = vmatmul.f32.vlgmr.msra.gmra.mxu2 %v702_v6  ;;  %v703_v9 = vsel %vm2693_vm10, %v701_v8, %v699_v3 }
 0x385   :  { %778 = vmatmul.f32.vlgmr.msra.gmra.mxu3 %v703_v9 }
 0x407   :  { %v759_v14 = vpop.f32.mrf.mxu2 }
 0x408   :  { %v760_v15 = vadd.f32 %v759_v14, %v740_v13  ;;  %v779_v16 = vpop.f32.mrf.mxu3 }
 0x40a   :  { %v780_v17 = vadd.f32 %v779_v16, %v760_v15  ;;  %v923_v15 = vld [vmem:[%s2685_s13 + $0x10] sm:$0xff]  ;;  %v924_v16 = vld [vmem:[%s2685_s13 + $0x18] sm:$0xff] }
 0x40c   :  { %1519 = vmatmul.msk.f32.vlgmr.msrb.gmra.mxu0 %vm789_vm14, %v780_v17  ;;  %1521 = vmatmul.msk.f32.vlgmr.msrb.gmra.mxu1 %vm789_vm14, %v780_v17 }
 0x414   :  { %1523 = vmatmul.msk.f32.vlgmr.msra.gmra.mxu0 %vm789_vm14, %v780_v17  ;;  %1525 = vmatmul.msk.f32.vlgmr.msra.gmra.mxu1 %vm789_vm14, %v780_v17 }
 0x489   :  { %v818_v18 = vpop.f32.mrf.mxu0  ;;  %v838_v19 = vpop.f32.mrf.mxu1 }
 0x48a   :  { %v883_v20 = vmul.f32 1.442695, %v838_v19  ;;  %v881_v21 = vmul.f32 1.442695, %v818_v18 }
 0x48c   :  { %1615 = vpow2.f32 %v883_v20  ;;  %v945_v20 = vld [vmem:[#allocation21 + $0x38] sm:$0xff] }
 0x48d   :  { %1617 = vpow2.f32 %v881_v21 }
 0x491   :  { %v858_v22 = vpop.f32.mrf.mxu0  ;;  %v878_v23 = vpop.f32.mrf.mxu1 }
 0x492   :  { %v885_v24 = vmul.f32 1.442695, %v858_v22  ;;  %v887_v25 = vmul.f32 1.442695, %v878_v23  ;;  %v1616_v26 = vpop.eup %1615 }
 0x493   :  { %v891_v27 = vperm.slane %v1616_v26, 2  ;;  %v1618_v28 = vpop.eup %1617 }
 0x494   :  { %1619 = vpow2.f32 %v885_v24  ;;  %v890_v35 = vperm.slane %v1618_v28, 2 }
 0x495   :  { %1621 = vpow2.f32 %v887_v25  ;;  %v898_v32 = vrot.slane %v891_v27, 6 }
 0x497   :  { %v901_v38 = vsel %vm2693_vm10, %v890_v35, %v898_v32 }
 0x49a   :  { %v1620_v29 = vpop.eup %1619 }
 0x49b   :  { %v1622_v30 = vpop.eup %1621  ;;  %v892_v31 = vperm.slane %v1620_v29, 2  ;;  %v963_v29 = vld [vmem:[#allocation24] sm:$0xff] }
 0x49c   :  { %v893_v33 = vperm.slane %v1622_v30, 2 }
 0x49d   :  { %v899_v34 = vrot.slane %v892_v31, 4 }
 0x49e   :  { %v900_v36 = vrot.slane %v893_v33, 2 }
 0x4a0   :  { %v903_v39 = vsel %vm902_vm15, %v899_v34, %v900_v36 }
 0x4a1   :  { %v904_v40 = vsel %vm404_vm13, %v901_v38, %v903_v39 }
 0x4a2   :  { %v906_v41 = vmul.f32 %v904_v40, %v889_v37 }
 0x4a4   :  { %908 = vst [vmem:[#allocation1] ss:$4 sm:$0xff] %v906_v41 }
 0x4ab   :  { %v910_v42 = vld.sshfl [vmem:[#allocation1 + $0x8] sm:$0xff pattern:$0x73625140]  ;;  %v909_v44 = vld.sshfl [vmem:[#allocation1] sm:$0xff pattern:$0x73625140] }
 0x4ac   :  { %v918_v43 = vadd.f32 %v910_v42, %v838_v19  ;;  %v917_v46 = vadd.f32 %v909_v44, %v818_v18  ;;  %v911_v54 = vld.sshfl [vmem:[#allocation1 + $0x10] sm:$0xff pattern:$0x73625140]  ;;  %v912_v55 = vld.sshfl [vmem:[#allocation1 + $0x18] sm:$0xff pattern:$0x73625140] }
 0x4ad   :  { %v919_v62 = vadd.f32 %v911_v54, %v858_v22  ;;  %v920_v63 = vadd.f32 %v912_v55, %v878_v23  ;;  %v944_v19 = vld [vmem:[#allocation21 + $0x30] sm:$0xff] }
 0x4ae   :  { %v930_v47 = vperm.slane %v918_v43, 0  ;;  %v947_v49 = vperm.slane %v918_v43, 1  ;;  %v929_v52 = vperm.slane %v917_v46, 0  ;;  %v946_v53 = vperm.slane %v917_v46, 1 }
 0x4af   :  { %v931_v6 = vperm.slane %v919_v62, 0  ;;  %v932_v8 = vperm.slane %v920_v63, 0  ;;  %v948_v17 = vperm.slane %v919_v62, 1  ;;  %v949_v18 = vperm.slane %v920_v63, 1 }
 0x4b0   :  { %v934_v56 = vmul.f32 %v930_v47, %v926_v45  ;;  %v933_v59 = vmul.f32 %v929_v52, %v925_v50  ;;  %v951_v61 = vmul.f32 %v947_v49, %v943_v48  ;;  %v950_v1 = vmul.f32 %v946_v53, %v942_v58  ;;  %v962_v53 = vld [vmem:[#allocation23] sm:$0xff] }
 0x4b1   :  { %v935_v13 = vmul.f32 %v931_v6, %v927_v10  ;;  %v936_v14 = vmul.f32 %v932_v8, %v928_v11  ;;  %v952_v23 = vmul.f32 %v948_v17, %v944_v19  ;;  %v953_v24 = vmul.f32 %v949_v18, %v945_v20  ;;  %v1137_v19 = vld [vmem:[%s2689_s17] sm:$0xff] }
 0x4b2   :  { %v938_v60 = vadd.f32 %v934_v56, %v922_v51  ;;  %v937_v0 = vadd.f32 %v933_v59, %v921_v57  ;;  %v299_v47 = vadd.s32 256, %v2200_v7  ;;  %v300_v48 = vadd.s32 384, %v2200_v7 }
 0x4b3   :  { %v939_v21 = vadd.f32 %v935_v13, %v923_v15  ;;  %v940_v22 = vadd.f32 %v936_v14, %v924_v16 }
 0x4b4   :  { %v955_v2 = vadd.f32 %v951_v61, %v938_v60  ;;  %v954_v3 = vadd.f32 %v950_v1, %v937_v0  ;;  %v2417_v49 = vand.u32 127, %v299_v47  ;;  %v2419_v50 = vand.u32 127, %v300_v48 }
 0x4b5   :  { %v956_v25 = vadd.f32 %v952_v23, %v939_v21  ;;  %v957_v26 = vadd.f32 %v953_v24, %v940_v22 }
 0x4b6   :  { %v959_v5 = vmax.f32 %v955_v2, 0.0  ;;  %v958_v9 = vmax.f32 %v954_v3, 0.0  ;;  %vm331_vm13 = vcmp.lt.s32.totalorder %v2417_v49, 126  ;;  %vm332_vm14 = vcmp.lt.s32.totalorder %v2419_v50, 126 }
 0x4b7   :  { %v2369_v27 = vmax.f32 %v956_v25, 0.0  ;;  %v2371_v28 = vmax.f32 %v957_v26, 0.0  ;;  %vm2696_vm15 = vcmp.lt.s32.totalorder %v2417_v49, 127  ;;  %vm330_vm10 = vcmp.lt.s32.totalorder %v2419_v50, 127 }
 0x4b8   :  { %1026 = vrot.lane.b32.xlu2 %v959_v5, %s2032_s3  ;;  %984 = vrot.lane.b32.xlu0 %v958_v9, %s2030_s15  ;;  %vm327_vm7 = vcmp.ge.s32.totalorder %v2417_v49, 1 }
 0x4b9   :  { %1024 = vrot.lane.b32.xlu1 %v958_v9, %s2032_s3 }
 0x4c0   :  { %1006 = vrot.lane.b32.xlu2 %v959_v5, %s2031_s24  ;;  %964 = vrot.lane.b32.xlu0 %v958_v9, %s2029_s14 }
 0x4c1   :  { %1004 = vrot.lane.b32.xlu1 %v958_v9, %s2031_s24 }
 0x4c8   :  { %1028 = vrot.lane.b32.xlu2 %v2369_v27, %s2032_s3  ;;  %1030 = vrot.lane.b32.xlu0 %v2371_v28, %s2032_s3 }
 0x4c9   :  { %990 = vrot.lane.b32.xlu1 %v2371_v28, %s2030_s15 }
 0x4d0   :  { %1008 = vrot.lane.b32.xlu2 %v2369_v27, %s2031_s24  ;;  %966 = vrot.lane.b32.xlu0 %v959_v5, %s2029_s14 }
 0x4d1   :  { %970 = vrot.lane.b32.xlu1 %v2371_v28, %s2029_s14 }
 0x4d8   :  { %986 = vrot.lane.b32.xlu2 %v959_v5, %s2030_s15  ;;  %1046 = vperm.xlu0 %1613, %v963_v29  }
 0x4d9   :  { %1010 = vrot.lane.b32.xlu1 %v2371_v28, %s2031_s24 }
 0x4e0   :  { %968 = vrot.lane.b32.xlu2 %v2369_v27, %s2029_s14 }
 0x4e1   :  { %988 = vrot.lane.b32.xlu1 %v2369_v27, %s2030_s15 }
 0x512   :  { %v1027_v30 = vpop.permute.xlu2 %1026 }
 0x51a   :  { %v1007_v31 = vpop.permute.xlu2 %1006 }
 0x522   :  { %v1029_v32 = vpop.permute.xlu2 %1028 }
 0x523   :  { %v1033_v33 = vsel %vm297_vm9, %v1027_v30, %v1029_v32 }
 0x524   :  { %1531 = vmatpush.msk.msrb.mxu1 %vm298_vm11, %v1033_v33 }
 0x52a   :  { %v1009_v34 = vpop.permute.xlu2 %1008  ;;  %v985_v36 = vpop.permute.xlu0 %984 }
 0x52b   :  { %v1013_v35 = vsel %vm295_vm4, %v1007_v31, %v1009_v34  ;;  %v1025_v37 = vpop.permute.xlu1 %1024 }
 0x52c   :  { %v1034_v38 = vsel %vm297_vm9, %v1025_v37, %v1027_v30  ;;  %1532 = vmatpush.msk.msrb.mxu1 %vm2698_vm8, %v1013_v35 }
 0x52d   :  { %1526 = vmatpush.msk.msrb.mxu0 %vm297_vm9, %v1034_v38 }
 0x52e   :  { %1085 = vmatpush.msrb.mxu1 %v959_v5 }
 0x532   :  { %v987_v39 = vpop.permute.xlu2 %986  ;;  %v965_v41 = vpop.permute.xlu0 %964 }
 0x533   :  { %v994_v40 = vsel %vm354_vm0, %v985_v36, %v987_v39  ;;  %v1005_v42 = vpop.permute.xlu1 %1004 }
 0x534   :  { %v1014_v43 = vsel %vm295_vm4, %v1005_v42, %v1007_v31  ;;  %1533 = vmatpush.msk.msrb.mxu1 %vm2697_vm3, %v994_v40  ;;  %vm326_vm3 = vcmp.ge.s32.totalorder %v2419_v50, 2  ;;  %v1136_v40 = vld [vmem:[%s2688_s16] sm:$0xff] }
 0x535   :  { %1527 = vmatpush.msk.msrb.mxu0 %vm295_vm4, %v1014_v43 }
 0x537   :  { %1065 = vmatpush.msrb.mxu0 %v958_v9 }
 0x53a   :  { %v1031_v44 = vpop.permute.xlu0 %1030  ;;  %v969_v0 = vpop.permute.xlu2 %968 }
 0x53b   :  { %v991_v45 = vpop.permute.xlu1 %990  ;;  %v1032_v56 = vsel %vm297_vm9, %v1029_v32, %v1031_v44  ;;  %v1035_v57 = vsel %vm297_vm9, %v1031_v44, %v1025_v37 }
 0x53c   :  { %v995_v46 = vsel %vm354_vm0, %v991_v45, %v985_v36 }
 0x53d   :  { %1528 = vmatpush.msk.msrb.mxu0 %vm2699_vm2, %v995_v46 }
 0x542   :  { %v967_v51 = vpop.permute.xlu0 %966 }
 0x543   :  { %v971_v52 = vpop.permute.xlu1 %970  ;;  %v974_v54 = vsel %vm345_vm1, %v965_v41, %v967_v51  ;;  %v973_v1 = vsel %vm345_vm1, %v967_v51, %v969_v0 }
 0x544   :  { %v975_v55 = vsel %vm345_vm1, %v971_v52, %v965_v41  ;;  %1534 = vmatpush.msk.msrb.mxu1 %vm2695_vm6, %v974_v54  ;;  %vm328_vm6 = vcmp.ge.s32.totalorder %v2419_v50, 1  ;;  %v972_v2 = vsel %vm345_vm1, %v969_v0, %v971_v52 }
 0x545   :  { %1529 = vmatpush.msk.msrb.mxu0 %vm291_vm5, %v975_v55  ;;  %1535 = vmatmul.msk.f32.vlgmr.msrb.gmra.mxu1 %vm520_vm12, %v962_v53 }
 0x546   :  { %1530 = vmatmul.msk.f32.vlgmr.msrb.gmra.mxu0 %vm520_vm12, %v962_v53  ;;  %1541 = vmatpush.msk.msra.mxu1 %vm332_vm14, %v1035_v57 }
 0x547   :  { %1536 = vmatpush.msk.msra.mxu0 %vm331_vm13, %v1032_v56 }
 0x54a   :  { %v1047_v3 = vpop.permute.xlu0 %1046 }
 0x54b   :  { %v1011_v58 = vpop.permute.xlu1 %1010 }
 0x54c   :  { %v1012_v59 = vsel %vm295_vm4, %v1009_v34, %v1011_v58  ;;  %v1015_v60 = vsel %vm295_vm4, %v1011_v58, %v1005_v42 }
 0x54d   :  { %1537 = vmatpush.msk.msra.mxu0 %vm2696_vm15, %v1012_v59  ;;  %1542 = vmatpush.msk.msra.mxu1 %vm330_vm10, %v1015_v60  ;;  %vm325_vm15 = vcmp.ge.s32.totalorder %v2417_v49, 2 }
 0x54f   :  { %1105 = vmatpush.msra.mxu0 %v2369_v27  ;;  %1125 = vmatpush.msra.mxu1 %v2371_v28 }
 0x553   :  { %v989_v61 = vpop.permute.xlu1 %988 }
 0x554   :  { %v992_v62 = vsel %vm354_vm0, %v989_v61, %v991_v45  ;;  %v993_v63 = vsel %vm354_vm0, %v987_v39, %v989_v61 }
 0x555   :  { %1538 = vmatpush.msk.msra.mxu0 %vm327_vm7, %v993_v63  ;;  %1543 = vmatpush.msk.msra.mxu1 %vm328_vm6, %v992_v62 }
 0x557   :  { %1539 = vmatpush.msk.msra.mxu0 %vm325_vm15, %v973_v1  ;;  %1544 = vmatpush.msk.msra.mxu1 %vm326_vm3, %v972_v2 }
 0x558   :  { %1540 = vmatmul.msk.f32.vlgmr.msra.gmra.mxu0 %vm520_vm12, %v962_v53  ;;  %1545 = vmatmul.msk.f32.vlgmr.msra.gmra.mxu1 %vm520_vm12, %v962_v53 }
 0x5c2   :  { %v1089_v6 = vpop.f32.mrf.mxu1 }
 0x5c3   :  { %v1069_v5 = vpop.f32.mrf.mxu0  ;;  %v1090_v9 = vadd.f32 %v1089_v6, %v1047_v3 }
 0x5c4   :  { %v1070_v8 = vadd.f32 %v1069_v5, %v1047_v3 }
 0x5c5   :  { %v1133_v11 = vmax.f32 %v1090_v9, 0.0 }
 0x5c6   :  { %v1132_v10 = vmax.f32 %v1070_v8, 0.0 }
 0x5c7   :  { %1172 = vrot.lane.b32.xlu0 %v1133_v11, %s2031_s24  ;;  %1188 = vrot.lane.b32.xlu1 %v1133_v11, %s2032_s3 }
 0x5c8   :  { %1186 = vrot.lane.b32.xlu2 %v1132_v10, %s2032_s3 }
 0x5cf   :  { %1154 = vrot.lane.b32.xlu1 %v1132_v10, %s2030_s15  ;;  %1170 = vrot.lane.b32.xlu0 %v1132_v10, %s2031_s24 }
 0x5d0   :  { %1156 = vrot.lane.b32.xlu2 %v1133_v11, %s2030_s15 }
 0x5d5   :  { %v1109_v13 = vpop.f32.mrf.mxu0  ;;  %v1129_v14 = vpop.f32.mrf.mxu1 }
 0x5d6   :  { %v1110_v15 = vadd.f32 %v1109_v13, %v1047_v3  ;;  %v1130_v16 = vadd.f32 %v1129_v14, %v1047_v3 }
 0x5d7   :  { %1138 = vrot.lane.b32.xlu1 %v1132_v10, %s2029_s14 }
 0x5d8   :  { %v1134_v17 = vmax.f32 %v1110_v15, 0.0  ;;  %v1135_v18 = vmax.f32 %v1130_v16, 0.0  ;;  %v1295_v15 = vld [vmem:[#allocation2] sm:$0x1] }
 0x5da   :  { %1190 = vrot.lane.b32.xlu2 %v1134_v17, %s2032_s3  ;;  %1192 = vrot.lane.b32.xlu0 %v1135_v18, %s2032_s3 }
 0x5df   :  { %1174 = vrot.lane.b32.xlu1 %v1134_v17, %s2031_s24 }
 0x5e2   :  { %1140 = vrot.lane.b32.xlu2 %v1133_v11, %s2029_s14  ;;  %1160 = vrot.lane.b32.xlu0 %v1135_v18, %s2030_s15 }
 0x5e7   :  { %1176 = vrot.lane.b32.xlu1 %v1135_v18, %s2031_s24 }
 0x5ea   :  { %1144 = vrot.lane.b32.xlu2 %v1135_v18, %s2029_s14  ;;  %1158 = vrot.lane.b32.xlu0 %v1134_v17, %s2030_s15 }
 0x5ef   :  { %1142 = vrot.lane.b32.xlu1 %v1134_v17, %s2029_s14 }
 0x5f2   :  { %1204 = vperm.xlu2 %1612, %v1137_v19  }
 0x622   :  { %v1187_v20 = vpop.permute.xlu2 %1186 }
 0x62a   :  { %v1157_v21 = vpop.permute.xlu2 %1156 }
 0x634   :  { %v1191_v22 = vpop.permute.xlu2 %1190 }
 0x639   :  { %v1173_v23 = vpop.permute.xlu0 %1172  ;;  %v1189_v24 = vpop.permute.xlu1 %1188 }
 0x63a   :  { %v1195_v25 = vsel %vm297_vm9, %v1189_v24, %v1191_v22  ;;  %v1196_v26 = vsel %vm297_vm9, %v1187_v20, %v1189_v24 }
 0x63b   :  { %1546 = vmatpush.msk.msrb.mxu2 %vm297_vm9, %v1196_v26  ;;  %1551 = vmatpush.msk.msrb.mxu3 %vm298_vm11, %v1195_v25 }
 0x63c   :  { %v1141_v31 = vpop.permute.xlu2 %1140 }
 0x641   :  { %v1171_v27 = vpop.permute.xlu0 %1170  ;;  %v1155_v28 = vpop.permute.xlu1 %1154 }
 0x642   :  { %v1180_v29 = vsel %vm295_vm4, %v1171_v27, %v1173_v23  ;;  %v1164_v41 = vsel %vm354_vm0, %v1155_v28, %v1157_v21 }
 0x643   :  { %1547 = vmatpush.msk.msrb.mxu2 %vm295_vm4, %v1180_v29 }
 0x644   :  { %v1145_v39 = vpop.permute.xlu2 %1144 }
 0x645   :  { %1223 = vmatpush.msrb.mxu2 %v1132_v10 }
 0x649   :  { %v1139_v30 = vpop.permute.xlu1 %1138 }
 0x64a   :  { %v1149_v42 = vsel %vm345_vm1, %v1145_v39, %v1139_v30  ;;  %v1148_v43 = vsel %vm345_vm1, %v1139_v30, %v1141_v31 }
 0x64c   :  { %v1193_v32 = vpop.permute.xlu0 %1192  ;;  %v1205_v55 = vpop.permute.xlu2 %1204 }
 0x64d   :  { %v1194_v33 = vsel %vm297_vm9, %v1191_v22, %v1193_v32  ;;  %v1197_v34 = vsel %vm297_vm9, %v1193_v32, %v1187_v20 }
 0x64e   :  { %1556 = vmatpush.msk.msrb.mxu0 %vm331_vm13, %v1194_v33  ;;  %1561 = vmatpush.msk.msrb.mxu1 %vm332_vm14, %v1197_v34  ;;  %v1294_v34 = vld [vmem:[%s2690_s18] sm:$0x1]  ;;  %s2034_s18 = smov [#allocation26]  }
 0x64f   :  { %s1475_s0 = sshll.u32 %s2034_s18, 4  ;;  %s1476_s0 = int_to_ptr.vmem [resolvable:$true] %s1475_s0 }
 0x651   :  { %v1175_v35 = vpop.permute.xlu1 %1174 }
 0x652   :  { %v1179_v36 = vsel %vm295_vm4, %v1173_v23, %v1175_v35 }
 0x653   :  { %1552 = vmatpush.msk.msrb.mxu3 %vm2698_vm8, %v1179_v36  ;;  %vm2710_vm8 = vcmp.ge.s32.totalorder %v2203_v12, 1 }
 0x654   :  { %v1161_v37 = vpop.permute.xlu0 %1160 }
 0x655   :  { %v1165_v38 = vsel %vm354_vm0, %v1161_v37, %v1155_v28  ;;  %1243 = vmatpush.msrb.mxu3 %v1133_v11 }
 0x656   :  { %1548 = vmatpush.msk.msrb.mxu2 %vm2699_vm2, %v1165_v38  ;;  %vm2711_vm2 = vcmp.ge.s32.totalorder %v2203_v12, 2 }
 0x657   :  { %1553 = vmatpush.msk.msrb.mxu3 %vm2710_vm8, %v1164_v41  ;;  %vm2712_vm8 = vcmp.lt.s32.totalorder %v2417_v49, 127 }
 0x658   :  { %1549 = vmatpush.msk.msrb.mxu2 %vm291_vm5, %v1149_v42 }
 0x659   :  { %1550 = vmatmul.msk.f32.vlgmr.msrb.gmra.mxu2 %vm520_vm12, %v1136_v40  ;;  %1554 = vmatpush.msk.msrb.mxu3 %vm2711_vm2, %v1148_v43  ;;  %v1177_v44 = vpop.permute.xlu1 %1176  ;;  %vm2713_vm2 = vcmp.lt.s32.totalorder %v2203_v12, 127 }
 0x65a   :  { %v1178_v45 = vsel %vm295_vm4, %v1175_v35, %v1177_v44  ;;  %v1181_v46 = vsel %vm295_vm4, %v1177_v44, %v1171_v27  ;;  %1555 = vmatmul.msk.f32.vlgmr.msrb.gmra.mxu3 %vm520_vm12, %v1136_v40 }
 0x65b   :  { %1557 = vmatpush.msk.msrb.mxu0 %vm2712_vm8, %v1178_v45  ;;  %1562 = vmatpush.msk.msrb.mxu1 %vm330_vm10, %v1181_v46 }
 0x65c   :  { %v1159_v47 = vpop.permute.xlu0 %1158 }
 0x65d   :  { %1263 = vmatpush.msrb.mxu0 %v1134_v17  ;;  %1283 = vmatpush.msrb.mxu1 %v1135_v18  ;;  %v1162_v48 = vsel %vm354_vm0, %v1159_v47, %v1161_v37  ;;  %v1163_v51 = vsel %vm354_vm0, %v1157_v21, %v1159_v47 }
 0x65f   :  { %1558 = vmatpush.msk.msrb.mxu0 %vm327_vm7, %v1163_v51  ;;  %1563 = vmatpush.msk.msrb.mxu1 %vm328_vm6, %v1162_v48 }
 0x661   :  { %v1143_v52 = vpop.permute.xlu1 %1142 }
 0x662   :  { %v1146_v53 = vsel %vm345_vm1, %v1143_v52, %v1145_v39  ;;  %v1147_v54 = vsel %vm345_vm1, %v1141_v31, %v1143_v52 }
 0x663   :  { %1559 = vmatpush.msk.msrb.mxu0 %vm325_vm15, %v1147_v54  ;;  %1564 = vmatpush.msk.msrb.mxu1 %vm326_vm3, %v1146_v53 }
 0x664   :  { %1560 = vmatmul.msk.f32.vlgmr.msrb.gmra.mxu0 %vm520_vm12, %v1136_v40  ;;  %1565 = vmatmul.msk.f32.vlgmr.msrb.gmra.mxu1 %vm520_vm12, %v1136_v40 }
 0x6dc   :  { %v1227_v56 = vpop.f32.mrf.mxu2 }
 0x6dd   :  { %v1228_v57 = vadd.f32 %v1227_v56, %v1205_v55  ;;  %v1247_v1 = vpop.f32.mrf.mxu3 }
 0x6de   :  { %v1248_v2 = vadd.f32 %v1247_v1, %v1205_v55 }
 0x6df   :  { %v1290_v58 = vmax.f32 %v1228_v57, 0.0 }
 0x6e0   :  { %v1291_v3 = vmax.f32 %v1248_v2, 0.0 }
 0x6e1   :  { %1328 = vrot.lane.b32.xlu2 %v1290_v58, %s2031_s24  ;;  %v1267_v59 = vpop.f32.mrf.mxu0  ;;  %v1287_v60 = vpop.f32.mrf.mxu1 }
 0x6e2   :  { %v1268_v61 = vadd.f32 %v1267_v59, %v1205_v55  ;;  %v1288_v62 = vadd.f32 %v1287_v60, %v1205_v55 }
 0x6e4   :  { %v2566_v63 = vmax.f32 %v1268_v61, 0.0  ;;  %v2568_v0 = vmax.f32 %v1288_v62, 0.0 }
 0x6e6   :  { %1332 = vrot.lane.b32.xlu0 %v2566_v63, %s2031_s24  ;;  %1348 = vrot.lane.b32.xlu1 %v2566_v63, %s2032_s3 }
 0x6e9   :  { %1350 = vrot.lane.b32.xlu2 %v2568_v0, %s2032_s3 }
 0x6ee   :  { %1312 = vrot.lane.b32.xlu0 %v1290_v58, %s2030_s15  ;;  %1344 = vrot.lane.b32.xlu1 %v1290_v58, %s2032_s3 }
 0x6f1   :  { %1330 = vrot.lane.b32.xlu2 %v1291_v3, %s2031_s24 }
 0x6f6   :  { %1296 = vrot.lane.b32.xlu0 %v1290_v58, %s2029_s14  ;;  %1314 = vrot.lane.b32.xlu1 %v1291_v3, %s2030_s15 }
 0x6f9   :  { %1318 = vrot.lane.b32.xlu2 %v2568_v0, %s2030_s15 }
 0x6fe   :  { %1346 = vrot.lane.b32.xlu0 %v1291_v3, %s2032_s3  ;;  %1298 = vrot.lane.b32.xlu1 %v1291_v3, %s2029_s14 }
 0x701   :  { %1316 = vrot.lane.b32.xlu2 %v2566_v63, %s2030_s15 }
 0x706   :  { %1302 = vrot.lane.b32.xlu1 %v2568_v0, %s2029_s14  ;;  %1334 = vrot.lane.b32.xlu0 %v2568_v0, %s2031_s24 }
 0x70e   :  { %1300 = vrot.lane.b32.xlu0 %v2566_v63, %s2029_s14  ;;  %1362 = vperm.xlu1 %1614, %v1295_v15  }
 0x73b   :  { %v1329_v5 = vpop.permute.xlu2 %1328 }
 0x743   :  { %v1351_v6 = vpop.permute.xlu2 %1350 }
 0x74b   :  { %v1331_v16 = vpop.permute.xlu2 %1330 }
 0x74c   :  { %v1338_v24 = vsel %vm295_vm4, %v1329_v5, %v1331_v16 }
 0x753   :  { %v1319_v21 = vpop.permute.xlu2 %1318 }
 0x758   :  { %v1333_v8 = vpop.permute.xlu0 %1332  ;;  %v1349_v9 = vpop.permute.xlu1 %1348 }
 0x759   :  { %v1352_v10 = vsel %vm297_vm9, %v1349_v9, %v1351_v6  ;;  %v1337_v25 = vsel %vm295_vm4, %v1331_v16, %v1333_v8 }
 0x75a   :  { %1576 = vmatpush.msk.msra.mxu0 %vm331_vm13, %v1352_v10  ;;  %vm2716_vm13 = vcmp.ge.s32.totalorder %v2203_v12, 2 }
 0x75b   :  { %v1317_v35 = vpop.permute.xlu2 %1316 }
 0x75c   :  { %v1320_v36 = vsel %vm354_vm0, %v1317_v35, %v1319_v21 }
 0x760   :  { %v1313_v11 = vpop.permute.xlu0 %1312  ;;  %v1345_v13 = vpop.permute.xlu1 %1344 }
 0x761   :  { %v1355_v14 = vsel %vm297_vm9, %v1351_v6, %v1345_v13  ;;  %v1323_v26 = vsel %vm354_vm0, %v1319_v21, %v1313_v11 }
 0x762   :  { %1581 = vmatpush.msk.msra.mxu1 %vm332_vm14, %v1355_v14  ;;  %vm2717_vm14 = vmmov %vm2712_vm8 }
 0x768   :  { %v1297_v17 = vpop.permute.xlu0 %1296  ;;  %v1315_v18 = vpop.permute.xlu1 %1314 }
 0x769   :  { %v1322_v27 = vsel %vm354_vm0, %v1313_v11, %v1315_v18 }
 0x770   :  { %v1347_v19 = vpop.permute.xlu0 %1346  ;;  %v1299_v20 = vpop.permute.xlu1 %1298 }
 0x771   :  { %v1353_v22 = vsel %vm297_vm9, %v1347_v19, %v1349_v9  ;;  %v1354_v23 = vsel %vm297_vm9, %v1345_v13, %v1347_v19  ;;  %v1306_v30 = vsel %vm345_vm1, %v1297_v17, %v1299_v20 }
 0x772   :  { %1566 = vmatpush.msk.msra.mxu2 %vm297_vm9, %v1354_v23  ;;  %1571 = vmatpush.msk.msra.mxu3 %vm298_vm11, %v1353_v22  ;;  %vm2714_vm9 = vcmp.ge.s32.totalorder %v2200_v7, 1  ;;  %vm2715_vm11 = vcmp.ge.s32.totalorder %v2203_v12, 1  ;;  %v1321_v12 = vsel %vm354_vm0, %v1315_v18, %v1317_v35  ;;  %vm1461_vm0 = vcmask 1042434  }
 0x774   :  { %1567 = vmatpush.msk.msra.mxu2 %vm295_vm4, %v1338_v24  ;;  %1572 = vmatpush.msk.msra.mxu3 %vm2713_vm2, %v1337_v25 }
 0x776   :  { %1382 = vmatpush.msra.mxu2 %v1290_v58  ;;  %1402 = vmatpush.msra.mxu3 %v1291_v3 }
 0x778   :  { %v1303_v28 = vpop.permute.xlu1 %1302  ;;  %v1335_v29 = vpop.permute.xlu0 %1334  ;;  %1568 = vmatpush.msk.msra.mxu2 %vm2714_vm9, %v1323_v26  ;;  %1573 = vmatpush.msk.msra.mxu3 %vm2715_vm11, %v1322_v27 }
 0x779   :  { %v1307_v31 = vsel %vm345_vm1, %v1303_v28, %v1297_v17  ;;  %v1336_v32 = vsel %vm295_vm4, %v1333_v8, %v1335_v29  ;;  %v1339_v33 = vsel %vm295_vm4, %v1335_v29, %v1329_v5  ;;  %vm2719_vm4 = vcmask 1041408  }
 0x77a   :  { %1569 = vmatpush.msk.msra.mxu2 %vm291_vm5, %v1307_v31  ;;  %1574 = vmatpush.msk.msra.mxu3 %vm2716_vm13, %v1306_v30 }
 0x77b   :  { %1577 = vmatpush.msk.msra.mxu0 %vm2717_vm14, %v1336_v32  ;;  %1582 = vmatpush.msk.msra.mxu1 %vm330_vm10, %v1339_v33 }
 0x77c   :  { %1575 = vmatmul.msk.f32.vlgmr.msra.gmra.mxu3 %vm520_vm12, %v1294_v34  ;;  %1570 = vmatmul.msk.f32.vlgmr.msra.gmra.mxu2 %vm520_vm12, %v1294_v34 }
 0x77d   :  { %1422 = vmatpush.msra.mxu0 %v2566_v63  ;;  %1442 = vmatpush.msra.mxu1 %v2568_v0 }
 0x77f   :  { %1578 = vmatpush.msk.msra.mxu0 %vm327_vm7, %v1321_v12  ;;  %1583 = vmatpush.msk.msra.mxu1 %vm328_vm6, %v1320_v36 }
 0x780   :  { %v1301_v37 = vpop.permute.xlu0 %1300  ;;  %v1363_v40 = vpop.permute.xlu1 %1362 }
 0x781   :  { %v1304_v38 = vsel %vm345_vm1, %v1301_v37, %v1303_v28  ;;  %v1305_v39 = vsel %vm345_vm1, %v1299_v20, %v1301_v37  ;;  %v1365_v41 = vperm.slane %v1363_v40, 0  ;;  %vm1467_vm1 = vcmp.lt.s32.totalorder %v264_v4, 512 }
 0x782   :  { %1579 = vmatpush.msk.msra.mxu0 %vm325_vm15, %v1305_v39  ;;  %1584 = vmatpush.msk.msra.mxu1 %vm326_vm3, %v1304_v38  ;;  %vm2718_vm3 = vcmask 1040384  }
 0x783   :  { %1580 = vmatmul.msk.f32.vlgmr.msra.gmra.mxu0 %vm520_vm12, %v1294_v34  ;;  %1585 = vmatmul.msk.f32.vlgmr.msra.gmra.mxu1 %vm520_vm12, %v1294_v34 }
 0x7ff   :  { %v1406_v42 = vpop.f32.mrf.mxu3  ;;  %v1386_v43 = vpop.f32.mrf.mxu2 }
 0x800   :  { %v1407_v44 = vadd.f32 %v1406_v42, %v1365_v41  ;;  %v1387_v45 = vadd.f32 %v1386_v43, %v1365_v41  ;;  %v1426_v46 = vpop.f32.mrf.mxu0  ;;  %v1446_v47 = vpop.f32.mrf.mxu1 }
 0x801   :  { %v1427_v7 = vadd.f32 %v1426_v46, %v1365_v41  ;;  %v1447_v48 = vadd.f32 %v1446_v47, %v1365_v41 }
 0x802   :  { %1623 = vtanh.f32 %v1407_v44 }
 0x803   :  { %1625 = vtanh.f32 %v1387_v45 }
 0x804   :  { %1627 = vtanh.f32 %v1427_v7 }
 0x805   :  { %1629 = vtanh.f32 %v1447_v48 }
 0x808   :  { %v1624_v49 = vpop.eup %1623 }
 0x809   :  { %v1626_v50 = vpop.eup %1625  ;;  %v1457_v52 = vrot.slane %v1624_v49, 7 }
 0x80a   :  { %v1628_v51 = vpop.eup %1627 }
 0x80b   :  { %v1630_v53 = vpop.eup %1629  ;;  %v1458_v54 = vrot.slane %v1628_v51, 6  ;;  %v1460_v57 = vsel %vm2718_vm3, %v1626_v50, %v1457_v52 }
 0x80c   :  { %v1459_v55 = vrot.slane %v1630_v53, 5 }
 0x80e   :  { %v1462_v56 = vsel %vm1461_vm0, %v1458_v54, %v1459_v55 }
 0x80f   :  { %v1463_v58 = vsel %vm2719_vm4, %v1460_v57, %v1462_v56 }
 0x810   :  { %1469 = vst.msk [vmem:[#allocation26] sm:$0xf] %vm1467_vm1, %v1463_v58 }
 0x811   :  { %1480 = dma.vmem_to_hbm [thread:$0]  %s1476_s0, 64, %s1478_s21, [#allocation5]  }
 0x812   :  { %2007 = dma.done.wait [#allocation5], 64  }
 0x813   :  { %2008 = vsyncadd [#allocation5], 4294967232 }
 0x814   :  { %1485 = vsyncpa [#allocation4], 1 }
 0x815   :  { %1486 = vsyncpa [#allocation7], 1 }
 0x816   :  { %1487 = vsyncpa [#allocation10], 1 }
 0x817   :  { %1488 = vsyncpa [#allocation13], 1 }
 0x818   :  { %1489 = vsyncpa [#allocation16], 1 }
 0x819   :  { %1490 = vsyncpa [#allocation19], 1 }
 0x81a   :  { %1491 = vsyncpa [#allocation22], 1 }
 0x81b   :  { %1492 = vsyncpa [#allocation25], 1 }
 0x81c   :  { %1493 = vsyncpa [#allocation5], 1 }

</bundles_post_ra>
